<compile_context>
chip_gen: v6e
topology: v6e:2x2x1
jax: 0.10.0
libtpu: 0.0.40
codegen_flags: <defaults>
</compile_context>

<pallas_src>
import functools

import jax
import jax.numpy as jnp
import numpy as np
from jax.experimental import pallas as pl
from jax.experimental.pallas import tpu as pltpu

OUT_H, OUT_W = 224, 224


def _bilinear_matrix(out_size: int, in_size: int) -> np.ndarray:
    """Interpolation matrix W (out_size, in_size) for align_corners=False bilinear."""
    scale = in_size / out_size
    dst = np.arange(out_size, dtype=np.float64)
    src = (dst + 0.5) * scale - 0.5
    src = np.maximum(src, 0.0)                       # PyTorch clamps negative src to 0
    i0 = np.floor(src).astype(np.int64)
    i0 = np.minimum(i0, in_size - 1)
    i1 = np.minimum(i0 + 1, in_size - 1)
    w1 = src - i0
    w0 = 1.0 - w1
    mat = np.zeros((out_size, in_size), dtype=np.float64)
    rows = np.arange(out_size)
    np.add.at(mat, (rows, i0), w0)
    np.add.at(mat, (rows, i1), w1)
    return mat.astype(np.float32)


def make_preprocess_constants(in_h: int, in_w: int, mean, std):
    """Host-side constant prep: bf16 interp matrices + f32 affine tables (1/255 folded)."""
    wh = _bilinear_matrix(OUT_H, in_h)                      # (224, H)
    ww = _bilinear_matrix(OUT_W, in_w)                      # (224, W)
    wh_bf16 = jnp.asarray(wh, dtype=jnp.bfloat16)           # (224, H)
    wwT_bf16 = jnp.asarray(ww.T, dtype=jnp.bfloat16)        # (W, 224)
    mean = np.asarray(mean, np.float32)
    std = np.asarray(std, np.float32)
    # out = (resize(x)/255 - mean)/std = resize(x) * inv_std + bias, with inv_std = 1/(255*std)
    inv_std = jnp.asarray(1.0 / (255.0 * std), dtype=jnp.float32)   # (C,)
    bias = jnp.asarray(-mean / std, dtype=jnp.float32)              # (C,)
    return wh_bf16, wwT_bf16, inv_std, bias


def _preprocess_kernel(inv_std_ref, bias_ref, x_ref, wh_ref, wwT_ref, o_ref):
    # Grid point n: x_ref holds Nb full (C, H, W) images.
    Nb, C, H, W = x_ref.shape
    v = x_ref[...].astype(jnp.float32)
    if jnp.issubdtype(x_ref.dtype, jnp.integer):
        # uint8 images arrive bit-cast to int8 (see wrapper): recover 0..255 in f32 directly.
        v = jnp.where(v < 0, v + 256.0, v)

    # Matmul 1 on one big slab: (Nb*C*H, W) @ (W, 224); bf16 operands, f32 MXU accumulation.
    xb = v.reshape(Nb * C * H, W).astype(jnp.bfloat16)
    t = jnp.dot(xb, wwT_ref[...], preferred_element_type=jnp.float32)     # (Nb*C*H, 224)
    # Leading-axis indexable form for the per-channel second matmul (no row-offset slicing).
    t3 = t.reshape(Nb * C, H, OUT_W).astype(jnp.bfloat16)                 # (Nb*C, H, 224)

    wh = wh_ref[...]                                                      # (224, H) bf16
    for s in range(Nb):                                                   # static unroll
        for c in range(C):
            y = jnp.dot(wh, t3[s * C + c], preferred_element_type=jnp.float32)  # (224, 224)
            # ((x/255 resized) - mean)/std folded to y * inv_std + bias (inv_std = 1/(255*std)).
            o_ref[s, c] = (y * inv_std_ref[c] + bias_ref[c]).astype(o_ref.dtype)


def _pick_batch_block(N, C, H, W, in_itemsize, out_itemsize):
    """Samples per grid step (divisor of N) from a conservative per-step VMEM estimate."""
    per_sample = (2 * C * H * W * in_itemsize             # double-buffered input block
                  + 2 * C * OUT_H * OUT_W * out_itemsize  # double-buffered output block
                  + C * H * W * (4 + 2)                   # f32 + bf16 widened copies of x
                  + C * H * OUT_W * (4 + 2))              # t in f32 and bf16
    budget = 24 << 20                                     # target working set
    nb_cap = max(1, budget // per_sample)
    if N >= 8:
        min_grid = 4       # keep some pipelining depth (DMA/compute overlap per core)
    elif N >= 2:
        min_grid = 2       # keep both v7x TensorCores busy
    else:
        min_grid = 1
    nb_cap = max(1, min(nb_cap, N // min_grid))
    nb = max(d for d in range(1, int(nb_cap) + 1) if N % d == 0)
    return nb, per_sample


@functools.partial(jax.jit, static_argnames=("out_dtype",))
def preprocessing_module(x, wh_bf16, wwT_bf16, inv_std, bias, out_dtype=jnp.float32):
    """x: (N, C, H, W), uint8 (0..255) or float (0..255). Returns (N, C, 224, 224)."""
    # TODO(synk): out_dtype=jnp.bfloat16 halves the dominant output writeback traffic, but
    # f32 is kept as the default since the wrapped downstream model is external.
    if x.dtype == jnp.uint8:
        # Same-width bitcast (free in XLA); kernel recovers the unsigned byte value.
        x = jax.lax.bitcast_convert_type(x, jnp.int8)
    N, C, H, W = x.shape
    in_itemsize = jnp.dtype(x.dtype).itemsize
    out_itemsize = jnp.dtype(out_dtype).itemsize

    Nb, per_sample = _pick_batch_block(N, C, H, W, in_itemsize, out_itemsize)

    # VMEM budget: blocks + intermediates + single-buffered constants + headroom.
    const_bytes = (OUT_H * H + W * OUT_W) * 2
    working = Nb * per_sample + const_bytes + OUT_H * OUT_W * 4
    vmem_limit = int(min(max(working + (16 << 20), 32 << 20), 56 << 20))

    out = pl.pallas_call(
        _preprocess_kernel,
        out_shape=jax.ShapeDtypeStruct((N, C, OUT_H, OUT_W), out_dtype),
        grid=(N // Nb,),
        in_specs=[
            # per-channel inv_std / bias: small scalar tables in SMEM
            pl.BlockSpec(memory_space=pltpu.MemorySpace.SMEM),
            pl.BlockSpec(memory_space=pltpu.MemorySpace.SMEM),
            # Nb whole (C, H, W) images per grid step
            pl.BlockSpec((Nb, C, H, W), lambda n: (n, 0, 0, 0)),
            # interpolation matrices: whole-array VMEM residents (single-buffered, no re-DMA)
            pl.BlockSpec(memory_space=pltpu.MemorySpace.VMEM),
            pl.BlockSpec(memory_space=pltpu.MemorySpace.VMEM),
        ],
        out_specs=pl.BlockSpec((Nb, C, OUT_H, OUT_W), lambda n: (n, 0, 0, 0)),
        compiler_params=pltpu.CompilerParams(
            dimension_semantics=("parallel",),
            vmem_limit_bytes=vmem_limit),
    )(inv_std, bias, x, wh_bf16, wwT_bf16)
    # TODO(synk): `self.model(x)` wraps an arbitrary external model; identity here.
    return out


if __name__ == "__main__":
    # Deterministic small example: batch=2, channels=3 (required by mean/std), 16x16 input.
    key = jax.random.PRNGKey(0)
    N, C, H, W = 2, 3, 16, 16
    x_u8 = jax.random.randint(key, (N, C, H, W), 0, 256,
                              dtype=jnp.int32).astype(jnp.uint8)

    mean = np.array([0.485, 0.456, 0.406], np.float32)
    std = np.array([0.229, 0.224, 0.225], np.float32)
    wh_bf16, wwT_bf16, inv_std, bias = make_preprocess_constants(H, W, mean, std)

    out = preprocessing_module(x_u8, wh_bf16, wwT_bf16, inv_std, bias)
    out = jax.block_until_ready(out)

    # f32 reference (same separable-matrix formulation, PyTorch-equivalent bilinear).
    wh = _bilinear_matrix(OUT_H, H)                  # (224, H)
    ww = _bilinear_matrix(OUT_W, W)                  # (224, W)
    xf = np.asarray(x_u8, np.float32) / 255.0
    ref = np.einsum('oh,nchw->ncow', wh, xf)
    ref = np.einsum('ncow,pw->ncop', ref, ww)
    ref = (ref - mean.reshape(1, 3, 1, 1)) / std.reshape(1, 3, 1, 1)

    assert out.shape == (N, C, OUT_H, OUT_W), out.shape
    assert out.dtype == jnp.float32
    assert bool(jnp.all(jnp.isfinite(out)))
    max_err = float(jnp.max(jnp.abs(out - jnp.asarray(ref))))
    assert max_err < 0.1, f"max abs err {max_err}"   # bf16 MXU tolerance
    print("KERNEL_OK")
</pallas_src>

<mosaic_0001>
module attributes {stable_mosaic.version = 11 : i64} {
  func.func @_preprocess_kernel(%arg0: i32, %arg1: memref<3xf32, #tpu.memory_space<smem>>, %arg2: memref<3xf32, #tpu.memory_space<smem>>, %arg3: memref<1x3x16x16xi8, #tpu.memory_space<vmem>>, %arg4: memref<224x16xbf16, #tpu.memory_space<vmem>>, %arg5: memref<16x224xbf16, #tpu.memory_space<vmem>>, %arg6: memref<1x3x224x224xf32, #tpu.memory_space<vmem>>) attributes {dimension_semantics = [#tpu.dimension_semantics<parallel>], iteration_bounds = array<i64: 2>, scalar_prefetch = 0 : i64, scratch_operands = 0 : i64, tpu.core_type = #tpu.core_type<tc>, window_params = [{transform_indices = @transform_0, window_bounds = array<i64: 3>}, {transform_indices = @transform_1, window_bounds = array<i64: 3>}, {transform_indices = @transform_2, window_bounds = array<i64: 1, 3, 16, 16>}, {pipeline_mode = #tpu.pipeline_mode<synchronous>, transform_indices = @transform_3, window_bounds = array<i64: 224, 16>}, {pipeline_mode = #tpu.pipeline_mode<synchronous>, transform_indices = @transform_4, window_bounds = array<i64: 16, 224>}, {transform_indices = @transform_5, window_bounds = array<i64: 1, 3, 224, 224>}]} {
    %c0 = arith.constant 0 : index
    %c0_0 = arith.constant 0 : index
    %c0_1 = arith.constant 0 : index
    %c0_2 = arith.constant 0 : index
    %0 = vector.load %arg3[%c0, %c0_0, %c0_1, %c0_2] : memref<1x3x16x16xi8, #tpu.memory_space<vmem>>, vector<1x3x16x16xi8>
    %1 = arith.sitofp %0 : vector<1x3x16x16xi8> to vector<1x3x16x16xf32>
    %cst = arith.constant 0.000000e+00 : f32
    %2 = vector.broadcast %cst : f32 to vector<1x3x16x16xf32>
    %3 = arith.cmpf olt, %1, %2 : vector<1x3x16x16xf32>
    %cst_3 = arith.constant 2.560000e+02 : f32
    %4 = vector.broadcast %cst_3 : f32 to vector<1x3x16x16xf32>
    %5 = arith.addf %1, %4 : vector<1x3x16x16xf32>
    %6 = arith.select %3, %5, %1 : vector<1x3x16x16xi1>, vector<1x3x16x16xf32>
    %7 = vector.shape_cast %6 : vector<1x3x16x16xf32> to vector<48x16xf32>
    %8 = arith.truncf %7 : vector<48x16xf32> to vector<48x16xbf16>
    %c0_4 = arith.constant 0 : index
    %c0_5 = arith.constant 0 : index
    %9 = vector.load %arg5[%c0_4, %c0_5] : memref<16x224xbf16, #tpu.memory_space<vmem>>, vector<16x224xbf16>
    %cst_6 = arith.constant dense<0.000000e+00> : vector<48x224xf32>
    %10 = tpu.matmul %8, %9, %cst_6 {dimension_numbers = #tpu.dot_dimension_numbers<[1], [0], [0], [1], [0, 0, 1, 1], [], []>} : vector<48x16xbf16>, vector<16x224xbf16>, vector<48x224xf32> -> vector<48x224xf32>
    %11 = vector.shape_cast %10 : vector<48x224xf32> to vector<3x16x224xf32>
    %12 = arith.truncf %11 : vector<3x16x224xf32> to vector<3x16x224xbf16>
    %c0_7 = arith.constant 0 : index
    %c0_8 = arith.constant 0 : index
    %13 = vector.load %arg4[%c0_7, %c0_8] : memref<224x16xbf16, #tpu.memory_space<vmem>>, vector<224x16xbf16>
    %14 = vector.extract_strided_slice %12 {offsets = [0, 0, 0], sizes = [1, 16, 224], strides = [1, 1, 1]} : vector<3x16x224xbf16> to vector<1x16x224xbf16>
    %15 = vector.shape_cast %14 : vector<1x16x224xbf16> to vector<16x224xbf16>
    %cst_9 = arith.constant dense<0.000000e+00> : vector<224x224xf32>
    %16 = tpu.matmul %13, %15, %cst_9 {dimension_numbers = #tpu.dot_dimension_numbers<[1], [0], [0], [1], [0, 0, 1, 1], [], []>} : vector<224x16xbf16>, vector<16x224xbf16>, vector<224x224xf32> -> vector<224x224xf32>
    %c0_10 = arith.constant 0 : index
    %17 = memref.load %arg1[%c0_10] : memref<3xf32, #tpu.memory_space<smem>>
    %18 = vector.broadcast %17 : f32 to vector<224x224xf32>
    %19 = arith.mulf %16, %18 : vector<224x224xf32>
    %c0_11 = arith.constant 0 : index
    %20 = memref.load %arg2[%c0_11] : memref<3xf32, #tpu.memory_space<smem>>
    %21 = vector.broadcast %20 : f32 to vector<224x224xf32>
    %22 = arith.addf %19, %21 : vector<224x224xf32>
    %c0_12 = arith.constant 0 : index
    %c0_13 = arith.constant 0 : index
    %c0_14 = arith.constant 0 : index
    %c0_15 = arith.constant 0 : index
    %23 = vector.load %arg6[%c0_12, %c0_13, %c0_14, %c0_15] : memref<1x3x224x224xf32, #tpu.memory_space<vmem>>, vector<1x1x224x224xf32>
    %24 = vector.shape_cast %23 : vector<1x1x224x224xf32> to vector<224x224xf32>
    %25 = vector.shape_cast %22 : vector<224x224xf32> to vector<1x1x224x224xf32>
    tpu.vector_store %arg6[%c0_12, %c0_13, %c0_14, %c0_15], %25 {strides = array<i32>} : memref<1x3x224x224xf32, #tpu.memory_space<vmem>>, vector<1x1x224x224xf32>,
    %26 = vector.extract_strided_slice %12 {offsets = [1, 0, 0], sizes = [1, 16, 224], strides = [1, 1, 1]} : vector<3x16x224xbf16> to vector<1x16x224xbf16>
    %27 = vector.shape_cast %26 : vector<1x16x224xbf16> to vector<16x224xbf16>
    %cst_16 = arith.constant dense<0.000000e+00> : vector<224x224xf32>
    %28 = tpu.matmul %13, %27, %cst_16 {dimension_numbers = #tpu.dot_dimension_numbers<[1], [0], [0], [1], [0, 0, 1, 1], [], []>} : vector<224x16xbf16>, vector<16x224xbf16>, vector<224x224xf32> -> vector<224x224xf32>
    %c1 = arith.constant 1 : index
    %29 = memref.load %arg1[%c1] : memref<3xf32, #tpu.memory_space<smem>>
    %30 = vector.broadcast %29 : f32 to vector<224x224xf32>
    %31 = arith.mulf %28, %30 : vector<224x224xf32>
    %c1_17 = arith.constant 1 : index
    %32 = memref.load %arg2[%c1_17] : memref<3xf32, #tpu.memory_space<smem>>
    %33 = vector.broadcast %32 : f32 to vector<224x224xf32>
    %34 = arith.addf %31, %33 : vector<224x224xf32>
    %c0_18 = arith.constant 0 : index
    %c1_19 = arith.constant 1 : index
    %c0_20 = arith.constant 0 : index
    %c0_21 = arith.constant 0 : index
    %35 = vector.load %arg6[%c0_18, %c1_19, %c0_20, %c0_21] : memref<1x3x224x224xf32, #tpu.memory_space<vmem>>, vector<1x1x224x224xf32>
    %36 = vector.shape_cast %35 : vector<1x1x224x224xf32> to vector<224x224xf32>
    %37 = vector.shape_cast %34 : vector<224x224xf32> to vector<1x1x224x224xf32>
    tpu.vector_store %arg6[%c0_18, %c1_19, %c0_20, %c0_21], %37 {strides = array<i32>} : memref<1x3x224x224xf32, #tpu.memory_space<vmem>>, vector<1x1x224x224xf32>,
    %38 = vector.extract_strided_slice %12 {offsets = [2, 0, 0], sizes = [1, 16, 224], strides = [1, 1, 1]} : vector<3x16x224xbf16> to vector<1x16x224xbf16>
    %39 = vector.shape_cast %38 : vector<1x16x224xbf16> to vector<16x224xbf16>
    %cst_22 = arith.constant dense<0.000000e+00> : vector<224x224xf32>
    %40 = tpu.matmul %13, %39, %cst_22 {dimension_numbers = #tpu.dot_dimension_numbers<[1], [0], [0], [1], [0, 0, 1, 1], [], []>} : vector<224x16xbf16>, vector<16x224xbf16>, vector<224x224xf32> -> vector<224x224xf32>
    %c2 = arith.constant 2 : index
    %41 = memref.load %arg1[%c2] : memref<3xf32, #tpu.memory_space<smem>>
    %42 = vector.broadcast %41 : f32 to vector<224x224xf32>
    %43 = arith.mulf %40, %42 : vector<224x224xf32>
    %c2_23 = arith.constant 2 : index
    %44 = memref.load %arg2[%c2_23] : memref<3xf32, #tpu.memory_space<smem>>
    %45 = vector.broadcast %44 : f32 to vector<224x224xf32>
    %46 = arith.addf %43, %45 : vector<224x224xf32>
    %c0_24 = arith.constant 0 : index
    %c2_25 = arith.constant 2 : index
    %c0_26 = arith.constant 0 : index
    %c0_27 = arith.constant 0 : index
    %47 = vector.load %arg6[%c0_24, %c2_25, %c0_26, %c0_27] : memref<1x3x224x224xf32, #tpu.memory_space<vmem>>, vector<1x1x224x224xf32>
    %48 = vector.shape_cast %47 : vector<1x1x224x224xf32> to vector<224x224xf32>
    %49 = vector.shape_cast %46 : vector<224x224xf32> to vector<1x1x224x224xf32>
    tpu.vector_store %arg6[%c0_24, %c2_25, %c0_26, %c0_27], %49 {strides = array<i32>} : memref<1x3x224x224xf32, #tpu.memory_space<vmem>>, vector<1x1x224x224xf32>,
    return
  }
  func.func @transform_0(%arg0: i32) -> i32 {
    %c0_i32 = arith.constant 0 : i32
    %c0_i32_0 = arith.constant 0 : i32
    return %c0_i32 : i32
  }
  func.func @transform_1(%arg0: i32) -> i32 {
    %c0_i32 = arith.constant 0 : i32
    %c0_i32_0 = arith.constant 0 : i32
    return %c0_i32 : i32
  }
  func.func @transform_2(%arg0: i32) -> (i32, i32, i32, i32) {
    %c0_i32 = arith.constant 0 : i32
    %c0_i32_0 = arith.constant 0 : i32
    %c0_i32_1 = arith.constant 0 : i32
    %c0_i32_2 = arith.constant 0 : i32
    return %arg0, %c0_i32, %c0_i32_0, %c0_i32_1 : i32, i32, i32, i32
  }
  func.func @transform_3(%arg0: i32) -> (i32, i32) {
    %c0_i32 = arith.constant 0 : i32
    %c0_i32_0 = arith.constant 0 : i32
    %c0_i32_1 = arith.constant 0 : i32
    return %c0_i32, %c0_i32_0 : i32, i32
  }
  func.func @transform_4(%arg0: i32) -> (i32, i32) {
    %c0_i32 = arith.constant 0 : i32
    %c0_i32_0 = arith.constant 0 : i32
    %c0_i32_1 = arith.constant 0 : i32
    return %c0_i32, %c0_i32_0 : i32, i32
  }
  func.func @transform_5(%arg0: i32) -> (i32, i32, i32, i32) {
    %c0_i32 = arith.constant 0 : i32
    %c0_i32_0 = arith.constant 0 : i32
    %c0_i32_1 = arith.constant 0 : i32
    %c0_i32_2 = arith.constant 0 : i32
    return %arg0, %c0_i32, %c0_i32_0, %c0_i32_1 : i32, i32, i32, i32
  }
}

</mosaic_0001>

<bundles_post_ra>
// kernel: preprocessing_module.1
= control target key start
LH: loop header
LB: loop body
LE: loop exit
PB: predicated region body
PF: predicated region fallthrough
CT: control target
= control target key end

     0   :  { %10 = vsyncpa [#allocation5], 0  ;;  %s3065_s0 = inlined_call_operand.hbm [shape: f32[3], index: 0, kind: input, shape index: {}]   ;;  %s3066_s1 = inlined_call_operand.hbm [shape: f32[3], index: 1, kind: input, shape index: {}]   ;;  %s3067_s2 = inlined_call_operand.vmem [shape: s8[2,3,16,16], index: 2, kind: input, shape index: {}]   ;;  %s3068_s3 = inlined_call_operand.vmem [shape: bf16[224,16], index: 3, kind: input, shape index: {}]   ;;  %s3069_s4 = inlined_call_operand.hbm [shape: bf16[16,224], index: 4, kind: input, shape index: {}]   ;;  %s3070_s5 = inlined_call_operand.hbm [shape: f32[2,3,224,224], index: 5, kind: output, shape index: {}]  }
   0x1   :  { %11 = vsyncpa [#allocation7], 0 }
   0x2   :  { %12 = vsyncpa [#allocation3], 0 }
   0x3   :  { %13 = vsyncpa [#allocation4], 0 }
   0x4   :  { %15 = vsyncpa [#allocation4 + $0x1], 0  ;;  %s2143_s18 = smov 0   ;;  %s2145_s19 = smov 0  }
   0x5   :  { %s2147_s20 = smov 0   ;;  %s2149_s21 = smov 0  }
   0x6 LB: > { %s2164_s22 = sadd.s32 4294967295, %s2102_s21   ;;  %s1680_s23 = sadd.s32 4294967294, %s2102_s21   ;;  %s2102_s21 = sphi %s2149_s21, %s3078_s21   ;;  %s2098_s20 = sphi %s2147_s20, %s3077_s20   ;;  %s2094_s19 = sphi %s2145_s19, %s3076_s19   ;;  %s2090_s18 = sphi %s2143_s18, %s3075_s18  }
   0x7   : > { %s2168_s24 = sadd.s32 1, %s2102_s21   ;;  %s138_s25 = sadd.s32 1, %s2098_s20 }
   0x8   : > { %s135_s26 = ssub.s32 %s2102_s21, %s2168_s24  ;;  %p148_p0 = scmp.ne.s32.totalorder %s2098_s20, %s2094_s19 }
   0x9   : > { %p136_p1 = scmp.eq.s32.totalorder %s135_s26, 0  ;;  %p149_p2 = scmp.eq.s32.totalorder %s2164_s22, 1 }
   0xa   : > { %p154_p3 = scmp.ne.s32.totalorder %s2094_s19, %s2090_s18  ;;  %p155_p4 = scmp.eq.s32.totalorder %s1680_s23, 1 }
   0xb   : > { %s2179_s27 = scalar_select %p136_p1, %s2098_s20, %s138_s25  }
   0xc   : > { %p2181_p5 = por %p149_p2, %p148_p0  ;;  %p2185_p6 = por %p155_p4, %p154_p3 }
   0xd   : > { %p1681_p7 = scmp.ge.s32.totalorder %s2102_s21, 1  ;;  %p162_p8 = scmp.lt.s32.totalorder %s2102_s21, 3 }
   0xe   : > { %p1918_p10 = scmp.eq.s32.totalorder %s2164_s22, 0  ;;  %s2104_s6 = smov [#allocation8]  }
   0xf   : > { %p2191_p9 = pnand %p1681_p7, %p162_p8  ;;  %s195_s7 = sshll.u32 %s2104_s6, 4  ;;  %s196_s7 = int_to_ptr.vmem [resolvable:$true] %s195_s7 }
  0x10   : > { %s2105_s9 = smov [#allocation2]   ;;  %s2106_s12 = smov [#allocation6]  }
  0x11   : > { %p1904_p11 = pneg %p2191_p9  ;;  %s2015_s15 = scalar_lea.vmem %s196_s7, 256 }
  0x12   : > { %p2016_p0 = scmp.ne.s32.totalorder %s196_s7, %s2015_s15  ;;  %p2023_p3 = scmp.lt.s32.totalorder %s196_s7, %s196_s7 }
  0x13   : > { %p2200_p12 = pnand %p1918_p10, %p1904_p11  ;;  %p2024_p4 = scmp.lt.s32.totalorder %s2015_s15, %s2015_s15 }
  0x15   : > { %1907 = dma.hbm_to_smem (!%p2200_p12), %s3065_s0, 16, %s2105_s9, [#allocation5]  }
  0x16   : > { %1910 = dma.hbm_to_smem (!%p2200_p12), %s3066_s1, 16, %s2106_s12, [#allocation7]  }
  0x17   : > { %p2006_p13 = pneg %p2200_p12  ;;  %p2025_p7 = por %p2024_p4, %p2023_p3 }
  0x19   : > { %p2018_p1 = pnand %p2016_p0, %p2006_p13 }
  0x1b   : > { %p2019_p2 = pneg %p2018_p1 }
  0x1d   : > { %p2026_p8 = pnand %p2025_p7, %p2019_p2 }
  0x1f   : > { %2029 = shalt.err (!%p2026_p8)
}
  0x20   : > { %s2107_s16 = smov 128   ;;  %s2108_s17 = smov 8  }
  0x21   : > { %1913 = dma.hbm_to_vmem [thread:$0]  (!%p2200_p12), %s3069_s4, 256, %s196_s7, [#allocation3], %s2107_s16, %s2107_s16, %s2108_s17  }
  0x22   : > { %219 = sbr.rel (%p2191_p9) target bundleno = 661 (0x295), region = 40 }
  0x27   : > { %2073 = dma.done.wait (%p1918_p10), [#allocation5], 16  }
  0x28   : > { %2075 = vsyncadd (%p1918_p10), [#allocation5], 4294967280 }
  0x29   : > { %2077 = dma.done.wait (%p1918_p10), [#allocation7], 16  }
  0x2a   : > { %2079 = vsyncadd (%p1918_p10), [#allocation7], 4294967280 }
  0x2b   : > { %2081 = dma.done.wait (%p1918_p10), [#allocation3], 256  }
  0x2c   : > { %2083 = vsyncadd (%p1918_p10), [#allocation3], 4294967040 }
  0x2d   : > { %233 = sfence }
  0x2e   : > { %v1965_v0 = vld [vmem:[#allocation8 + $0x4] ss:$8 sps:$4 sm:$0xff]   ;;  %p256_p9 = scmp.lt.s32.totalorder %s2164_s22, 1  ;;  %v1967_v1 = vld [vmem:[#allocation8] ss:$8 sps:$4 sm:$0xff]   ;;  %v2109_v2 = vmov 0  }
  0x2f   : > { %355 = vmatprep.mubr.bf16.mxu0 %v2109_v2  ;;  %614 = vmatprep.mubr.bf16.mxu1 %v2109_v2  ;;  %vm313_vm2 = vcmask 130048   ;;  %v2251_v39 = vld [vmem:[%s3068_s3] sm:$0xff]   ;;  %v2256_v40 = vld [vmem:[%s3068_s3 + $0x28] sm:$0xff]   ;;  %v2267_v47 = vld [vmem:[%s3068_s3 + $0x30] sm:$0xff]   ;;  %s763_s6 = sld [smem:[#allocation6]]  ;;  %s253_s7 = sand.u32 1, %s2094_s19  }
  0x30   : > { %337 = vmatprep.subr.bf16.mxu0 %v1965_v0  ;;  %s257_s26 = scalar_select %p256_p9, %s2164_s22, 1  ;;  %v1974_v48 = vld [vmem:[%s3068_s3 + $0x8] sm:$0xff]   ;;  %v2280_v54 = vld [vmem:[%s3068_s3 + $0x38] sm:$0xff]   ;;  %v1976_v55 = vld [vmem:[%s3068_s3 + $0x10] sm:$0xff]   ;;  %vm822_vm7 = vcmask 785408  }
  0x31   : > { %338 = vmatpush1.bf16.msra.mxu0 %v1967_v1  ;;  %v2293_v56 = vld [vmem:[%s3068_s3 + $0x40] sm:$0xff]   ;;  %v1978_v57 = vld [vmem:[%s3068_s3 + $0x18] sm:$0xff]   ;;  %v1973_v58 = vld [vmem:[%s3068_s3 + $0x48] sm:$0xff]   ;;  %s2502_s10 = sld [smem:[#allocation2 + $0x1]]  ;;  %s1889_s14 = smul.u32 21504, %s2164_s22 }
  0x32   : > { %s1888_s30 = smul.u32 12, %s257_s26  ;;  %v1980_v59 = vld [vmem:[%s3068_s3 + $0x20] sm:$0xff]   ;;  %v1975_v60 = vld [vmem:[%s3068_s3 + $0x50] sm:$0xff]   ;;  %v1977_v61 = vld [vmem:[%s3068_s3 + $0x58] sm:$0xff]   ;;  %s2512_s11 = sld [smem:[#allocation6 + $0x1]] }
  0x33   : > { %v1979_v62 = vld [vmem:[%s3068_s3 + $0x60] sm:$0xff]   ;;  %v1981_v63 = vld [vmem:[%s3068_s3 + $0x68] sm:$0xff]   ;;  %s2624_s12 = sld [smem:[#allocation2 + $0x2]]  ;;  %s3015_s23 = scalar_lea.hbm %s3070_s5, %s1889_s14 }
  0x34   : > { %s260_s8 = scalar_lea.vmem %s3067_s2, %s1888_s30  ;;  %s705_s30 = sld [smem:[#allocation2]] }
  0x35   : > { %v1872_v3 = vld [vmem:[%s260_s8] sm:$0xff]   ;;  %v1886_v8 = vld [vmem:[%s260_s8 + $0x8] sm:$0xf]   ;;  %s1887_s8 = smul.u32 1344, %s253_s7  ;;  %s2634_s13 = sld [smem:[#allocation6 + $0x2]] }
  0x36   : > { %v1873_v4 = vunpack.c.0.s8 %v1872_v3  ;;  %v1874_v5 = vunpack.c.1.s8 %v1872_v3  ;;  %v1877_v6 = vunpack.c.2.s8 %v1872_v3  ;;  %v1878_v7 = vunpack.c.3.s8 %v1872_v3  ;;  %s3025_s22 = scalar_lea.sflag [#allocation4], %s253_s7  ;;  %s2110_s26 = smov [#allocation9]  }
  0x37   : > { %v1881_v15 = vunpack.c.0.s8 %v1886_v8  ;;  %v1882_v16 = vunpack.c.1.s8 %v1886_v8  ;;  %v2402_v3 = vstv %s763_s6  ;;  %s2410_s9 = scalar_lea.vmem [#allocation9], %s1887_s8 }
  0x38   : > { %v274_v9 = vcvt.s32.f32 %v1873_v4  ;;  %v275_v10 = vcvt.s32.f32 %v1874_v5  ;;  %v276_v11 = vcvt.s32.f32 %v1877_v6  ;;  %v277_v12 = vcvt.s32.f32 %v1878_v7  ;;  %s1584_s15 = sshll.u32 %s2410_s9, 4  ;;  %s3017_s15 = int_to_ptr.vmem [resolvable:$true] %s1584_s15 }
  0x39   : > { %v278_v24 = vcvt.s32.f32 %v1881_v15  ;;  %v279_v25 = vcvt.s32.f32 %v1882_v16  ;;  %s2030_s25 = scalar_lea.vmem %s3017_s15, 21504 }
  0x3a   : > { %vm280_vm0 = vcmp.lt.f32.partialorder %v274_v9, 0.0  ;;  %vm281_vm1 = vcmp.lt.f32.partialorder %v275_v10, 0.0  ;;  %v286_v13 = vadd.f32 256.0, %v274_v9  ;;  %v287_v14 = vadd.f32 256.0, %v275_v10  ;;  %p2031_p10 = scmp.ne.s32.totalorder %s3017_s15, %s2030_s25 }
  0x3b   : > { %v288_v19 = vadd.f32 256.0, %v276_v11  ;;  %v289_v20 = vadd.f32 256.0, %v277_v12  ;;  %vm282_vm3 = vcmp.lt.f32.partialorder %v276_v11, 0.0  ;;  %vm283_vm4 = vcmp.lt.f32.partialorder %v277_v12, 0.0 }
  0x3c   : > { %v292_v17 = vsel %vm280_vm0, %v286_v13, %v274_v9  ;;  %v293_v18 = vsel %vm281_vm1, %v287_v14, %v275_v10  ;;  %v290_v27 = vadd.f32 256.0, %v278_v24  ;;  %v291_v28 = vadd.f32 256.0, %v279_v25  ;;  %p2032_p11 = pnand %p2031_p10, %p2181_p5 }
  0x3d   : > { %v298_v21 = vpack.c.bf16 %v293_v18, %v292_v17  ;;  %v294_v22 = vsel %vm282_vm3, %v288_v19, %v276_v11  ;;  %v295_v23 = vsel %vm283_vm4, %v289_v20, %v277_v12  ;;  %vm284_vm5 = vcmp.lt.f32.partialorder %v278_v24, 0.0 }
  0x3e   : > { %v299_v26 = vpack.c.bf16 %v295_v23, %v294_v22  ;;  %vm285_vm6 = vcmp.lt.f32.partialorder %v279_v25, 0.0  ;;  %v296_v29 = vsel %vm284_vm5, %v290_v27, %v278_v24  ;;  %v2400_v0 = vstv %s705_s30  ;;  %p2033_p12 = pneg %p2032_p11  ;;  %s2034_s30 = sshll.u32 %s2110_s26, 4  ;;  %s2035_s30 = int_to_ptr.vmem [resolvable:$false] %s2034_s30 }
  0x3f   : > { %1693 = vmatmul.mubr.msk.bf16.vlgmr.msra.gmra.mxu0 %vm313_vm2, %v298_v21  ;;  %v297_v30 = vsel %vm285_vm6, %v291_v28, %v279_v25  ;;  %s2036_s6 = scalar_lea.vmem %s2035_s30, 43008  ;;  %p2037_p13 = scmp.lt.s32.totalorder %s3017_s15, %s2035_s30 }
  0x40   : > { %365 = vmatprep.mubr.bf16.mxu0 %v2109_v2  ;;  %v300_v31 = vpack.c.bf16 %v297_v30, %v296_v29  ;;  %p2038_p0 = scmp.lt.s32.totalorder %s2036_s6, %s2030_s25 }
  0x42   : > { %p2039_p1 = por %p2038_p0, %p2037_p13 }
  0x44   : > { %p2040_p2 = pnand %p2039_p1, %p2033_p12 }
  0x47   : > { %1694 = vmatmul.mubr.msk.bf16.gmra.mxu0 %vm313_vm2, %v299_v26 }
  0x48   : > { %375 = vmatprep.mubr.bf16.mxu0 %v2109_v2 }
  0x4f   : > { %1695 = vmatmul.mubr.msk.bf16.gmra.mxu0 %vm313_vm2, %v300_v31 }
  0x50   : > { %564 = vmatprep.mubr.bf16.mxu0 %v2109_v2 }
  0xff   : > { %v357_v32 = vpop.f32.mrf.mxu0 }
 0x101   : > { %v359_v33 = vpop.f32.mrf.mxu0 }
 0x103   : > { %v361_v34 = vpop.f32.mrf.mxu0 }
 0x104   : > { %v386_v37 = vpack.c.bf16 %v361_v34, %v357_v32 }
 0x105   : > { %v363_v35 = vpop.f32.mrf.mxu0 }
 0x106   : > { %v387_v36 = vpack.c.bf16 %v363_v35, %v359_v33 }
 0x107   : > { %v367_v38 = vpop.f32.mrf.mxu0 }
 0x108   : > { %546 = vmatprep.subr.bf16.mxu0 %v387_v36  ;;  %1883 = vmatprep.subr.bf16.mxu1 %v387_v36 }
 0x109   : > { %v369_v41 = vpop.f32.mrf.mxu0  ;;  %547 = vmatpush1.bf16.msra.mxu0 %v386_v37  ;;  %1884 = vmatpush1.bf16.msra.mxu1 %v386_v37 }
 0x10b   : > { %v371_v42 = vpop.f32.mrf.mxu0 }
 0x10c   : > { %1710 = vmatmul.mubr.msk.bf16.vlgmr.msra.gmra.mxu0 %vm313_vm2, %v2251_v39  ;;  %1715 = vmatmul.mubr.msk.bf16.vlgmr.msra.gmra.mxu1 %vm313_vm2, %v2256_v40  ;;  %v388_v43 = vpack.c.bf16 %v371_v42, %v367_v38 }
 0x10d   : > { %v373_v44 = vpop.f32.mrf.mxu0  ;;  %624 = vmatprep.mubr.bf16.mxu1 %v2109_v2  ;;  %574 = vmatprep.mubr.bf16.mxu0 %v2109_v2 }
 0x10e   : > { %v389_v45 = vpack.c.bf16 %v373_v44, %v369_v41 }
 0x10f   : > { %v377_v46 = vpop.f32.mrf.mxu0 }
 0x110   : > { %892 = vmatprep.subr.bf16.mxu0 %v389_v45 }
 0x111   : > { %v379_v49 = vpop.f32.mrf.mxu0  ;;  %893 = vmatpush1.bf16.msra.mxu0 %v388_v43 }
 0x113   : > { %v381_v50 = vpop.f32.mrf.mxu0 }
 0x114   : > { %1716 = vmatmul.mubr.msk.bf16.gmra.mxu1 %vm313_vm2, %v2267_v47  ;;  %1711 = vmatmul.mubr.msk.bf16.gmra.mxu0 %vm313_vm2, %v1974_v48  ;;  %v390_v51 = vpack.c.bf16 %v381_v50, %v377_v46 }
 0x115   : > { %v383_v52 = vpop.f32.mrf.mxu0  ;;  %634 = vmatprep.mubr.bf16.mxu1 %v2109_v2  ;;  %584 = vmatprep.mubr.bf16.mxu0 %v2109_v2 }
 0x116   : > { %v391_v53 = vpack.c.bf16 %v383_v52, %v379_v49 }
 0x118   : > { %1238 = vmatprep.subr.bf16.mxu1 %v391_v53 }
 0x119   : > { %1239 = vmatpush1.bf16.msra.mxu1 %v390_v51 }
 0x11c   : > { %1717 = vmatmul.mubr.msk.bf16.gmra.mxu1 %vm313_vm2, %v2280_v54  ;;  %1712 = vmatmul.mubr.msk.bf16.gmra.mxu0 %vm313_vm2, %v1976_v55 }
 0x11d   : > { %644 = vmatprep.mubr.bf16.mxu1 %v2109_v2  ;;  %594 = vmatprep.mubr.bf16.mxu0 %v2109_v2 }
 0x124   : > { %1718 = vmatmul.mubr.msk.bf16.gmra.mxu1 %vm313_vm2, %v2293_v56  ;;  %1713 = vmatmul.mubr.msk.bf16.gmra.mxu0 %vm313_vm2, %v1978_v57 }
 0x125   : > { %654 = vmatprep.mubr.bf16.mxu1 %v2109_v2  ;;  %604 = vmatprep.mubr.bf16.mxu0 %v2109_v2 }
 0x12c   : > { %1719 = vmatmul.mubr.msk.bf16.gmra.mxu1 %vm313_vm2, %v1973_v58  ;;  %1714 = vmatmul.mubr.msk.bf16.gmra.mxu0 %vm313_vm2, %v1980_v59 }
 0x12d   : > { %664 = vmatprep.mubr.bf16.mxu1 %v2109_v2  ;;  %910 = vmatprep.mubr.bf16.mxu0 %v2109_v2 }
 0x134   : > { %1720 = vmatmul.mubr.msk.bf16.gmra.mxu1 %vm313_vm2, %v1975_v60  ;;  %1724 = vmatmul.mubr.msk.bf16.vlgmr.msra.gmra.mxu0 %vm313_vm2, %v2251_v39 }
 0x135   : > { %674 = vmatprep.mubr.bf16.mxu1 %v2109_v2  ;;  %920 = vmatprep.mubr.bf16.mxu0 %v2109_v2 }
 0x13c   : > { %1721 = vmatmul.mubr.msk.bf16.gmra.mxu1 %vm313_vm2, %v1977_v61  ;;  %1725 = vmatmul.mubr.msk.bf16.gmra.mxu0 %vm313_vm2, %v1974_v48 }
 0x13d   : > { %684 = vmatprep.mubr.bf16.mxu1 %v2109_v2  ;;  %930 = vmatprep.mubr.bf16.mxu0 %v2109_v2 }
 0x144   : > { %1722 = vmatmul.mubr.msk.bf16.gmra.mxu1 %vm313_vm2, %v1979_v62  ;;  %1726 = vmatmul.mubr.msk.bf16.gmra.mxu0 %vm313_vm2, %v1976_v55 }
 0x145   : > { %694 = vmatprep.mubr.bf16.mxu1 %v2109_v2  ;;  %940 = vmatprep.mubr.bf16.mxu0 %v2109_v2 }
 0x14c   : > { %1723 = vmatmul.mubr.msk.bf16.gmra.mxu1 %vm313_vm2, %v1981_v63  ;;  %1727 = vmatmul.mubr.msk.bf16.gmra.mxu0 %vm313_vm2, %v1978_v57 }
 0x14d   : > { %1256 = vmatprep.mubr.bf16.mxu1 %v2109_v2  ;;  %950 = vmatprep.mubr.bf16.mxu0 %v2109_v2 }
 0x154   : > { %1796 = vmatmul.mubr.msk.bf16.vlgmr.msra.gmra.mxu1 %vm313_vm2, %v2251_v39  ;;  %1728 = vmatmul.mubr.msk.bf16.gmra.mxu0 %vm313_vm2, %v1980_v59 }
 0x155   : > { %1266 = vmatprep.mubr.bf16.mxu1 %v2109_v2  ;;  %960 = vmatprep.mubr.bf16.mxu0 %v2109_v2 }
 0x15c   : > { %1797 = vmatmul.mubr.msk.bf16.gmra.mxu1 %vm313_vm2, %v1974_v48  ;;  %1729 = vmatmul.mubr.msk.bf16.gmra.mxu0 %vm313_vm2, %v2256_v40 }
 0x15d   : > { %1276 = vmatprep.mubr.bf16.mxu1 %v2109_v2  ;;  %970 = vmatprep.mubr.bf16.mxu0 %v2109_v2 }
 0x164   : > { %1798 = vmatmul.mubr.msk.bf16.gmra.mxu1 %vm313_vm2, %v1976_v55  ;;  %1730 = vmatmul.mubr.msk.bf16.gmra.mxu0 %vm313_vm2, %v2267_v47 }
 0x165   : > { %1286 = vmatprep.mubr.bf16.mxu1 %v2109_v2  ;;  %980 = vmatprep.mubr.bf16.mxu0 %v2109_v2 }
 0x16c   : > { %1799 = vmatmul.mubr.msk.bf16.gmra.mxu1 %vm313_vm2, %v1978_v57  ;;  %1731 = vmatmul.mubr.msk.bf16.gmra.mxu0 %vm313_vm2, %v2280_v54 }
 0x16d   : > { %1296 = vmatprep.mubr.bf16.mxu1 %v2109_v2  ;;  %990 = vmatprep.mubr.bf16.mxu0 %v2109_v2 }
 0x174   : > { %1800 = vmatmul.mubr.msk.bf16.gmra.mxu1 %vm313_vm2, %v1980_v59  ;;  %1732 = vmatmul.mubr.msk.bf16.gmra.mxu0 %vm313_vm2, %v2293_v56 }
 0x175   : > { %1306 = vmatprep.mubr.bf16.mxu1 %v2109_v2  ;;  %1000 = vmatprep.mubr.bf16.mxu0 %v2109_v2 }
 0x17c   : > { %1801 = vmatmul.mubr.msk.bf16.gmra.mxu1 %vm313_vm2, %v2256_v40  ;;  %1733 = vmatmul.mubr.msk.bf16.gmra.mxu0 %vm313_vm2, %v1973_v58 }
 0x17d   : > { %1316 = vmatprep.mubr.bf16.mxu1 %v2109_v2  ;;  %1010 = vmatprep.mubr.bf16.mxu0 %v2109_v2 }
 0x184   : > { %1802 = vmatmul.mubr.msk.bf16.gmra.mxu1 %vm313_vm2, %v2267_v47  ;;  %1734 = vmatmul.mubr.msk.bf16.gmra.mxu0 %vm313_vm2, %v1975_v60 }
 0x185   : > { %1326 = vmatprep.mubr.bf16.mxu1 %v2109_v2  ;;  %1020 = vmatprep.mubr.bf16.mxu0 %v2109_v2 }
 0x18c   : > { %1803 = vmatmul.mubr.msk.bf16.gmra.mxu1 %vm313_vm2, %v2280_v54  ;;  %1735 = vmatmul.mubr.msk.bf16.gmra.mxu0 %vm313_vm2, %v1977_v61 }
 0x18d   : > { %1336 = vmatprep.mubr.bf16.mxu1 %v2109_v2  ;;  %1030 = vmatprep.mubr.bf16.mxu0 %v2109_v2 }
 0x194   : > { %1804 = vmatmul.mubr.msk.bf16.gmra.mxu1 %vm313_vm2, %v2293_v56  ;;  %1736 = vmatmul.mubr.msk.bf16.gmra.mxu0 %vm313_vm2, %v1979_v62 }
 0x195   : > { %1346 = vmatprep.mubr.bf16.mxu1 %v2109_v2  ;;  %1040 = vmatprep.mubr.bf16.mxu0 %v2109_v2 }
 0x19c   : > { %1805 = vmatmul.mubr.msk.bf16.gmra.mxu1 %vm313_vm2, %v1973_v58  ;;  %1737 = vmatmul.mubr.msk.bf16.gmra.mxu0 %vm313_vm2, %v1981_v63 }
 0x19d   : > { %1356 = vmatprep.mubr.bf16.mxu1 %v2109_v2 }
 0x1a4   : > { %1806 = vmatmul.mubr.msk.bf16.gmra.mxu1 %vm313_vm2, %v1975_v60 }
 0x1a5   : > { %1366 = vmatprep.mubr.bf16.mxu1 %v2109_v2 }
 0x1ac   : > { %1807 = vmatmul.mubr.msk.bf16.gmra.mxu1 %vm313_vm2, %v1977_v61 }
 0x1ad   : > { %1376 = vmatprep.mubr.bf16.mxu1 %v2109_v2 }
 0x1b4   : > { %1808 = vmatmul.mubr.msk.bf16.gmra.mxu1 %vm313_vm2, %v1979_v62 }
 0x1b5   : > { %1386 = vmatprep.mubr.bf16.mxu1 %v2109_v2 }
 0x1bc   : > { %1809 = vmatmul.mubr.msk.bf16.gmra.mxu1 %vm313_vm2, %v1981_v63 }
 0x1cc   : > { %v616_v1 = vpop.f32.mrf.mxu1  ;;  %v566_v4 = vpop.f32.mrf.mxu0 }
 0x1cd   : > { %v727_v5 = vmul.f32 %v2400_v0, %v616_v1  ;;  %v707_v6 = vmul.f32 %v2400_v0, %v566_v4 }
 0x1ce   : > { %v618_v7 = vpop.f32.mrf.mxu1  ;;  %v568_v8 = vpop.f32.mrf.mxu0 }
 0x1cf   : > { %v785_v2 = vadd.f32 %v2402_v3, %v727_v5  ;;  %v728_v9 = vmul.f32 %v2400_v0, %v618_v7  ;;  %v765_v10 = vadd.f32 %v2402_v3, %v707_v6  ;;  %v708_v11 = vmul.f32 %v2400_v0, %v568_v8 }
 0x1d0   : > { %v620_v12 = vpop.f32.mrf.mxu1  ;;  %v570_v13 = vpop.f32.mrf.mxu0 }
 0x1d1   : > { %842 = vst [vmem:[%s2410_s9 + $0xa0] sm:$0xff] %v785_v2  ;;  %v786_v14 = vadd.f32 %v2402_v3, %v728_v9  ;;  %v729_v15 = vmul.f32 %v2400_v0, %v620_v12  ;;  %821 = vst [vmem:[%s2410_s9] sm:$0xff] %v765_v10  ;;  %v766_v16 = vadd.f32 %v2402_v3, %v708_v11 }
 0x1d2   : > { %v709_v17 = vmul.f32 %v2400_v0, %v570_v13  ;;  %v622_v18 = vpop.f32.mrf.mxu1  ;;  %v572_v19 = vpop.f32.mrf.mxu0 }
 0x1d3   : > { %843 = vst.msk [vmem:[%s2410_s9 + $0xa8] sm:$0xff] %vm822_vm7, %v786_v14  ;;  %v787_v20 = vadd.f32 %v2402_v3, %v729_v15  ;;  %v730_v21 = vmul.f32 %v2400_v0, %v622_v18  ;;  %823 = vst.msk [vmem:[%s2410_s9 + $0x8] sm:$0xff] %vm822_vm7, %v766_v16  ;;  %v710_v23 = vmul.f32 %v2400_v0, %v572_v19 }
 0x1d4   : > { %v767_v22 = vadd.f32 %v2402_v3, %v709_v17  ;;  %v626_v24 = vpop.f32.mrf.mxu1  ;;  %v576_v25 = vpop.f32.mrf.mxu0 }
 0x1d5   : > { %844 = vst [vmem:[%s2410_s9 + $0xb0] sm:$0xff] %v787_v20  ;;  %v788_v26 = vadd.f32 %v2402_v3, %v730_v21  ;;  %v731_v27 = vmul.f32 %v2400_v0, %v626_v24  ;;  %v768_v28 = vadd.f32 %v2402_v3, %v710_v23  ;;  %v711_v29 = vmul.f32 %v2400_v0, %v576_v25 }
 0x1d6   : > { %824 = vst [vmem:[%s2410_s9 + $0x10] sm:$0xff] %v767_v22  ;;  %v628_v30 = vpop.f32.mrf.mxu1  ;;  %v578_v31 = vpop.f32.mrf.mxu0 }
 0x1d7   : > { %845 = vst.msk [vmem:[%s2410_s9 + $0xb8] sm:$0xff] %vm822_vm7, %v788_v26  ;;  %v789_v32 = vadd.f32 %v2402_v3, %v731_v27  ;;  %v732_v33 = vmul.f32 %v2400_v0, %v628_v30  ;;  %825 = vst.msk [vmem:[%s2410_s9 + $0x18] sm:$0xff] %vm822_vm7, %v768_v28  ;;  %v769_v34 = vadd.f32 %v2402_v3, %v711_v29 }
 0x1d8   : > { %v712_v35 = vmul.f32 %v2400_v0, %v578_v31  ;;  %v630_v36 = vpop.f32.mrf.mxu1  ;;  %v580_v37 = vpop.f32.mrf.mxu0 }
 0x1d9   : > { %846 = vst [vmem:[%s2410_s9 + $0xc0] sm:$0xff] %v789_v32  ;;  %v790_v38 = vadd.f32 %v2402_v3, %v732_v33  ;;  %v733_v39 = vmul.f32 %v2400_v0, %v630_v36  ;;  %826 = vst [vmem:[%s2410_s9 + $0x20] sm:$0xff] %v769_v34  ;;  %v713_v41 = vmul.f32 %v2400_v0, %v580_v37 }
 0x1da   : > { %v770_v40 = vadd.f32 %v2402_v3, %v712_v35  ;;  %v632_v42 = vpop.f32.mrf.mxu1  ;;  %v582_v43 = vpop.f32.mrf.mxu0 }
 0x1db   : > { %847 = vst.msk [vmem:[%s2410_s9 + $0xc8] sm:$0xff] %vm822_vm7, %v790_v38  ;;  %v791_v44 = vadd.f32 %v2402_v3, %v733_v39  ;;  %v734_v45 = vmul.f32 %v2400_v0, %v632_v42  ;;  %v771_v46 = vadd.f32 %v2402_v3, %v713_v41  ;;  %v714_v47 = vmul.f32 %v2400_v0, %v582_v43 }
 0x1dc   : > { %827 = vst.msk [vmem:[%s2410_s9 + $0x28] sm:$0xff] %vm822_vm7, %v770_v40  ;;  %v636_v48 = vpop.f32.mrf.mxu1  ;;  %v586_v49 = vpop.f32.mrf.mxu0 }
 0x1dd   : > { %848 = vst [vmem:[%s2410_s9 + $0xd0] sm:$0xff] %v791_v44  ;;  %v792_v50 = vadd.f32 %v2402_v3, %v734_v45  ;;  %v735_v51 = vmul.f32 %v2400_v0, %v636_v48  ;;  %828 = vst [vmem:[%s2410_s9 + $0x30] sm:$0xff] %v771_v46  ;;  %v772_v52 = vadd.f32 %v2402_v3, %v714_v47 }
 0x1de   : > { %v715_v53 = vmul.f32 %v2400_v0, %v586_v49  ;;  %v638_v54 = vpop.f32.mrf.mxu1  ;;  %v588_v55 = vpop.f32.mrf.mxu0 }
 0x1df   : > { %849 = vst.msk [vmem:[%s2410_s9 + $0xd8] sm:$0xff] %vm822_vm7, %v792_v50  ;;  %v793_v56 = vadd.f32 %v2402_v3, %v735_v51  ;;  %v736_v57 = vmul.f32 %v2400_v0, %v638_v54  ;;  %829 = vst.msk [vmem:[%s2410_s9 + $0x38] sm:$0xff] %vm822_vm7, %v772_v52  ;;  %v716_v59 = vmul.f32 %v2400_v0, %v588_v55  ;;  %v2535_v54 = vstv %s2502_s10 }
 0x1e0   : > { %v773_v58 = vadd.f32 %v2402_v3, %v715_v53  ;;  %v640_v60 = vpop.f32.mrf.mxu1  ;;  %v590_v61 = vpop.f32.mrf.mxu0 }
 0x1e1   : > { %850 = vst [vmem:[%s2410_s9 + $0xe0] sm:$0xff] %v793_v56  ;;  %v794_v62 = vadd.f32 %v2402_v3, %v736_v57  ;;  %v737_v63 = vmul.f32 %v2400_v0, %v640_v60  ;;  %v774_v1 = vadd.f32 %v2402_v3, %v716_v59  ;;  %v717_v4 = vmul.f32 %v2400_v0, %v590_v61 }
 0x1e2   : > { %830 = vst [vmem:[%s2410_s9 + $0x40] sm:$0xff] %v773_v58  ;;  %v642_v5 = vpop.f32.mrf.mxu1  ;;  %v592_v6 = vpop.f32.mrf.mxu0  ;;  %v2546_v61 = vstv %s2512_s11 }
 0x1e3   : > { %851 = vst.msk [vmem:[%s2410_s9 + $0xe8] sm:$0xff] %vm822_vm7, %v794_v62  ;;  %v795_v7 = vadd.f32 %v2402_v3, %v737_v63  ;;  %v738_v8 = vmul.f32 %v2400_v0, %v642_v5  ;;  %831 = vst.msk [vmem:[%s2410_s9 + $0x48] sm:$0xff] %vm822_vm7, %v774_v1  ;;  %v775_v2 = vadd.f32 %v2402_v3, %v717_v4 }
 0x1e4   : > { %v718_v9 = vmul.f32 %v2400_v0, %v592_v6  ;;  %v646_v10 = vpop.f32.mrf.mxu1  ;;  %v596_v11 = vpop.f32.mrf.mxu0 }
 0x1e5   : > { %852 = vst [vmem:[%s2410_s9 + $0xf0] sm:$0xff] %v795_v7  ;;  %v796_v12 = vadd.f32 %v2402_v3, %v738_v8  ;;  %v739_v13 = vmul.f32 %v2400_v0, %v646_v10  ;;  %832 = vst [vmem:[%s2410_s9 + $0x50] sm:$0xff] %v775_v2  ;;  %v719_v15 = vmul.f32 %v2400_v0, %v596_v11 }
 0x1e6   : > { %v776_v14 = vadd.f32 %v2402_v3, %v718_v9  ;;  %v648_v16 = vpop.f32.mrf.mxu1  ;;  %v598_v17 = vpop.f32.mrf.mxu0 }
 0x1e7   : > { %853 = vst.msk [vmem:[%s2410_s9 + $0xf8] sm:$0xff] %vm822_vm7, %v796_v12  ;;  %v797_v18 = vadd.f32 %v2402_v3, %v739_v13  ;;  %v740_v19 = vmul.f32 %v2400_v0, %v648_v16  ;;  %v777_v20 = vadd.f32 %v2402_v3, %v719_v15  ;;  %v720_v21 = vmul.f32 %v2400_v0, %v598_v17 }
 0x1e8   : > { %833 = vst.msk [vmem:[%s2410_s9 + $0x58] sm:$0xff] %vm822_vm7, %v776_v14  ;;  %v650_v22 = vpop.f32.mrf.mxu1  ;;  %v600_v23 = vpop.f32.mrf.mxu0 }
 0x1e9   : > { %854 = vst [vmem:[%s2410_s9 + $0x100] sm:$0xff] %v797_v18  ;;  %v798_v24 = vadd.f32 %v2402_v3, %v740_v19  ;;  %v741_v25 = vmul.f32 %v2400_v0, %v650_v22  ;;  %834 = vst [vmem:[%s2410_s9 + $0x60] sm:$0xff] %v777_v20  ;;  %v778_v26 = vadd.f32 %v2402_v3, %v720_v21 }
 0x1ea   : > { %v721_v27 = vmul.f32 %v2400_v0, %v600_v23  ;;  %v652_v28 = vpop.f32.mrf.mxu1  ;;  %v602_v29 = vpop.f32.mrf.mxu0 }
 0x1eb   : > { %855 = vst.msk [vmem:[%s2410_s9 + $0x108] sm:$0xff] %vm822_vm7, %v798_v24  ;;  %v799_v30 = vadd.f32 %v2402_v3, %v741_v25  ;;  %v742_v31 = vmul.f32 %v2400_v0, %v652_v28  ;;  %835 = vst.msk [vmem:[%s2410_s9 + $0x68] sm:$0xff] %vm822_vm7, %v778_v26  ;;  %v722_v33 = vmul.f32 %v2400_v0, %v602_v29 }
 0x1ec   : > { %v779_v32 = vadd.f32 %v2402_v3, %v721_v27  ;;  %v656_v34 = vpop.f32.mrf.mxu1  ;;  %v606_v35 = vpop.f32.mrf.mxu0 }
 0x1ed   : > { %856 = vst [vmem:[%s2410_s9 + $0x110] sm:$0xff] %v799_v30  ;;  %v800_v36 = vadd.f32 %v2402_v3, %v742_v31  ;;  %v743_v37 = vmul.f32 %v2400_v0, %v656_v34  ;;  %v780_v38 = vadd.f32 %v2402_v3, %v722_v33  ;;  %v723_v39 = vmul.f32 %v2400_v0, %v606_v35 }
 0x1ee   : > { %836 = vst [vmem:[%s2410_s9 + $0x70] sm:$0xff] %v779_v32  ;;  %v658_v40 = vpop.f32.mrf.mxu1  ;;  %v608_v41 = vpop.f32.mrf.mxu0 }
 0x1ef   : > { %857 = vst.msk [vmem:[%s2410_s9 + $0x118] sm:$0xff] %vm822_vm7, %v800_v36  ;;  %v801_v42 = vadd.f32 %v2402_v3, %v743_v37  ;;  %v744_v43 = vmul.f32 %v2400_v0, %v658_v40  ;;  %837 = vst.msk [vmem:[%s2410_s9 + $0x78] sm:$0xff] %vm822_vm7, %v780_v38  ;;  %v781_v44 = vadd.f32 %v2402_v3, %v723_v39 }
 0x1f0   : > { %v724_v45 = vmul.f32 %v2400_v0, %v608_v41  ;;  %v660_v46 = vpop.f32.mrf.mxu1  ;;  %v610_v47 = vpop.f32.mrf.mxu0 }
 0x1f1   : > { %858 = vst [vmem:[%s2410_s9 + $0x120] sm:$0xff] %v801_v42  ;;  %v802_v48 = vadd.f32 %v2402_v3, %v744_v43  ;;  %v745_v49 = vmul.f32 %v2400_v0, %v660_v46  ;;  %838 = vst [vmem:[%s2410_s9 + $0x80] sm:$0xff] %v781_v44  ;;  %v725_v51 = vmul.f32 %v2400_v0, %v610_v47 }
 0x1f2   : > { %v782_v50 = vadd.f32 %v2402_v3, %v724_v45  ;;  %v662_v52 = vpop.f32.mrf.mxu1  ;;  %v612_v53 = vpop.f32.mrf.mxu0 }
 0x1f3   : > { %859 = vst.msk [vmem:[%s2410_s9 + $0x128] sm:$0xff] %vm822_vm7, %v802_v48  ;;  %v803_v55 = vadd.f32 %v2402_v3, %v745_v49  ;;  %v746_v56 = vmul.f32 %v2400_v0, %v662_v52  ;;  %v783_v57 = vadd.f32 %v2402_v3, %v725_v51  ;;  %v726_v58 = vmul.f32 %v2400_v0, %v612_v53 }
 0x1f4   : > { %839 = vst.msk [vmem:[%s2410_s9 + $0x88] sm:$0xff] %vm822_vm7, %v782_v50  ;;  %v666_v59 = vpop.f32.mrf.mxu1  ;;  %v912_v60 = vpop.f32.mrf.mxu0 }
 0x1f5   : > { %860 = vst [vmem:[%s2410_s9 + $0x130] sm:$0xff] %v803_v55  ;;  %v804_v62 = vadd.f32 %v2402_v3, %v746_v56  ;;  %v747_v63 = vmul.f32 %v2400_v0, %v666_v59  ;;  %840 = vst [vmem:[%s2410_s9 + $0x90] sm:$0xff] %v783_v57  ;;  %v784_v1 = vadd.f32 %v2402_v3, %v726_v58 }
 0x1f6   : > { %v1053_v4 = vmul.f32 %v2535_v54, %v912_v60  ;;  %v668_v5 = vpop.f32.mrf.mxu1  ;;  %v914_v6 = vpop.f32.mrf.mxu0 }
 0x1f7   : > { %861 = vst.msk [vmem:[%s2410_s9 + $0x138] sm:$0xff] %vm822_vm7, %v804_v62  ;;  %v805_v7 = vadd.f32 %v2402_v3, %v747_v63  ;;  %v748_v8 = vmul.f32 %v2400_v0, %v668_v5  ;;  %841 = vst.msk [vmem:[%s2410_s9 + $0x98] sm:$0xff] %vm822_vm7, %v784_v1  ;;  %v1054_v9 = vmul.f32 %v2535_v54, %v914_v6 }
 0x1f8   : > { %v1111_v2 = vadd.f32 %v2546_v61, %v1053_v4  ;;  %v670_v10 = vpop.f32.mrf.mxu1  ;;  %v916_v11 = vpop.f32.mrf.mxu0 }
 0x1f9   : > { %862 = vst [vmem:[%s2410_s9 + $0x140] sm:$0xff] %v805_v7  ;;  %v806_v12 = vadd.f32 %v2402_v3, %v748_v8  ;;  %v749_v13 = vmul.f32 %v2400_v0, %v670_v10  ;;  %v1112_v14 = vadd.f32 %v2546_v61, %v1054_v9  ;;  %v1055_v15 = vmul.f32 %v2535_v54, %v916_v11 }
 0x1fa   : > { %1740 = vst [vmem:[%s2410_s9 + $0x1c0] sm:$0xff] %v1111_v2  ;;  %v672_v16 = vpop.f32.mrf.mxu1  ;;  %v918_v17 = vpop.f32.mrf.mxu0 }
 0x1fb   : > { %863 = vst.msk [vmem:[%s2410_s9 + $0x148] sm:$0xff] %vm822_vm7, %v806_v12  ;;  %v807_v18 = vadd.f32 %v2402_v3, %v749_v13  ;;  %v750_v19 = vmul.f32 %v2400_v0, %v672_v16  ;;  %1741 = vst.msk [vmem:[%s2410_s9 + $0x1c8] sm:$0xff] %vm822_vm7, %v1112_v14  ;;  %v1113_v20 = vadd.f32 %v2546_v61, %v1055_v15 }
 0x1fc   : > { %v1056_v21 = vmul.f32 %v2535_v54, %v918_v17  ;;  %v676_v22 = vpop.f32.mrf.mxu1  ;;  %v922_v23 = vpop.f32.mrf.mxu0 }
 0x1fd   : > { %864 = vst [vmem:[%s2410_s9 + $0x150] sm:$0xff] %v807_v18  ;;  %v808_v24 = vadd.f32 %v2402_v3, %v750_v19  ;;  %v751_v25 = vmul.f32 %v2400_v0, %v676_v22  ;;  %1742 = vst [vmem:[%s2410_s9 + $0x1d0] sm:$0xff] %v1113_v20  ;;  %v1057_v27 = vmul.f32 %v2535_v54, %v922_v23 }
 0x1fe   : > { %v1114_v26 = vadd.f32 %v2546_v61, %v1056_v21  ;;  %v678_v28 = vpop.f32.mrf.mxu1  ;;  %v924_v29 = vpop.f32.mrf.mxu0 }
 0x1ff   : > { %865 = vst.msk [vmem:[%s2410_s9 + $0x158] sm:$0xff] %vm822_vm7, %v808_v24  ;;  %v809_v30 = vadd.f32 %v2402_v3, %v751_v25  ;;  %v752_v31 = vmul.f32 %v2400_v0, %v678_v28  ;;  %v1115_v32 = vadd.f32 %v2546_v61, %v1057_v27  ;;  %v1058_v33 = vmul.f32 %v2535_v54, %v924_v29 }
 0x200   : > { %1743 = vst.msk [vmem:[%s2410_s9 + $0x1d8] sm:$0xff] %vm822_vm7, %v1114_v26  ;;  %v680_v34 = vpop.f32.mrf.mxu1  ;;  %v926_v35 = vpop.f32.mrf.mxu0  ;;  %v2657_v29 = vstv %s2624_s12 }
 0x201   : > { %866 = vst [vmem:[%s2410_s9 + $0x160] sm:$0xff] %v809_v30  ;;  %v810_v36 = vadd.f32 %v2402_v3, %v752_v31  ;;  %v753_v37 = vmul.f32 %v2400_v0, %v680_v34  ;;  %1744 = vst [vmem:[%s2410_s9 + $0x1e0] sm:$0xff] %v1115_v32  ;;  %v1116_v38 = vadd.f32 %v2546_v61, %v1058_v33 }
 0x202   : > { %v1059_v39 = vmul.f32 %v2535_v54, %v926_v35  ;;  %v682_v40 = vpop.f32.mrf.mxu1  ;;  %v928_v41 = vpop.f32.mrf.mxu0 }
 0x203   : > { %867 = vst.msk [vmem:[%s2410_s9 + $0x168] sm:$0xff] %vm822_vm7, %v810_v36  ;;  %v811_v42 = vadd.f32 %v2402_v3, %v753_v37  ;;  %v754_v43 = vmul.f32 %v2400_v0, %v682_v40  ;;  %1745 = vst.msk [vmem:[%s2410_s9 + $0x1e8] sm:$0xff] %vm822_vm7, %v1116_v38  ;;  %v1060_v45 = vmul.f32 %v2535_v54, %v928_v41  ;;  %v2668_v36 = vstv %s2634_s13 }
 0x204   : > { %v1117_v44 = vadd.f32 %v2546_v61, %v1059_v39  ;;  %v686_v46 = vpop.f32.mrf.mxu1  ;;  %v932_v47 = vpop.f32.mrf.mxu0 }
 0x205   : > { %868 = vst [vmem:[%s2410_s9 + $0x170] sm:$0xff] %v811_v42  ;;  %v812_v48 = vadd.f32 %v2402_v3, %v754_v43  ;;  %v755_v49 = vmul.f32 %v2400_v0, %v686_v46  ;;  %v1118_v50 = vadd.f32 %v2546_v61, %v1060_v45  ;;  %v1061_v51 = vmul.f32 %v2535_v54, %v932_v47 }
 0x206   : > { %1746 = vst [vmem:[%s2410_s9 + $0x1f0] sm:$0xff] %v1117_v44  ;;  %v688_v52 = vpop.f32.mrf.mxu1  ;;  %v934_v53 = vpop.f32.mrf.mxu0 }
 0x207   : > { %869 = vst.msk [vmem:[%s2410_s9 + $0x178] sm:$0xff] %vm822_vm7, %v812_v48  ;;  %v813_v55 = vadd.f32 %v2402_v3, %v755_v49  ;;  %v756_v56 = vmul.f32 %v2400_v0, %v688_v52  ;;  %1747 = vst.msk [vmem:[%s2410_s9 + $0x1f8] sm:$0xff] %vm822_vm7, %v1118_v50  ;;  %v1119_v57 = vadd.f32 %v2546_v61, %v1061_v51 }
 0x208   : > { %v1062_v58 = vmul.f32 %v2535_v54, %v934_v53  ;;  %v690_v59 = vpop.f32.mrf.mxu1  ;;  %v936_v60 = vpop.f32.mrf.mxu0 }
 0x209   : > { %870 = vst [vmem:[%s2410_s9 + $0x180] sm:$0xff] %v813_v55  ;;  %v814_v62 = vadd.f32 %v2402_v3, %v756_v56  ;;  %v757_v63 = vmul.f32 %v2400_v0, %v690_v59  ;;  %1748 = vst [vmem:[%s2410_s9 + $0x200] sm:$0xff] %v1119_v57  ;;  %v1063_v4 = vmul.f32 %v2535_v54, %v936_v60 }
 0x20a   : > { %v1120_v1 = vadd.f32 %v2546_v61, %v1062_v58  ;;  %v692_v5 = vpop.f32.mrf.mxu1  ;;  %v938_v6 = vpop.f32.mrf.mxu0 }
 0x20b   : > { %871 = vst.msk [vmem:[%s2410_s9 + $0x188] sm:$0xff] %vm822_vm7, %v814_v62  ;;  %v815_v7 = vadd.f32 %v2402_v3, %v757_v63  ;;  %v758_v8 = vmul.f32 %v2400_v0, %v692_v5  ;;  %v1121_v2 = vadd.f32 %v2546_v61, %v1063_v4  ;;  %v1064_v9 = vmul.f32 %v2535_v54, %v938_v6 }
 0x20c   : > { %1749 = vst.msk [vmem:[%s2410_s9 + $0x208] sm:$0xff] %vm822_vm7, %v1120_v1  ;;  %v696_v10 = vpop.f32.mrf.mxu1  ;;  %v942_v11 = vpop.f32.mrf.mxu0 }
 0x20d   : > { %872 = vst [vmem:[%s2410_s9 + $0x190] sm:$0xff] %v815_v7  ;;  %v816_v12 = vadd.f32 %v2402_v3, %v758_v8  ;;  %v759_v13 = vmul.f32 %v2400_v0, %v696_v10  ;;  %1750 = vst [vmem:[%s2410_s9 + $0x210] sm:$0xff] %v1121_v2  ;;  %v1122_v14 = vadd.f32 %v2546_v61, %v1064_v9 }
 0x20e   : > { %v1065_v15 = vmul.f32 %v2535_v54, %v942_v11  ;;  %v698_v16 = vpop.f32.mrf.mxu1  ;;  %v944_v17 = vpop.f32.mrf.mxu0 }
 0x20f   : > { %873 = vst.msk [vmem:[%s2410_s9 + $0x198] sm:$0xff] %vm822_vm7, %v816_v12  ;;  %v817_v18 = vadd.f32 %v2402_v3, %v759_v13  ;;  %v760_v19 = vmul.f32 %v2400_v0, %v698_v16  ;;  %1751 = vst.msk [vmem:[%s2410_s9 + $0x218] sm:$0xff] %vm822_vm7, %v1122_v14  ;;  %v1066_v21 = vmul.f32 %v2535_v54, %v944_v17 }
 0x210   : > { %v1123_v20 = vadd.f32 %v2546_v61, %v1065_v15  ;;  %v700_v22 = vpop.f32.mrf.mxu1  ;;  %v946_v23 = vpop.f32.mrf.mxu0 }
 0x211   : > { %874 = vst [vmem:[%s2410_s9 + $0x1a0] sm:$0xff] %v817_v18  ;;  %v818_v24 = vadd.f32 %v2402_v3, %v760_v19  ;;  %v761_v25 = vmul.f32 %v2400_v0, %v700_v22  ;;  %v1124_v26 = vadd.f32 %v2546_v61, %v1066_v21  ;;  %v1067_v27 = vmul.f32 %v2535_v54, %v946_v23 }
 0x212   : > { %1752 = vst [vmem:[%s2410_s9 + $0x220] sm:$0xff] %v1123_v20  ;;  %v702_v28 = vpop.f32.mrf.mxu1  ;;  %v948_v30 = vpop.f32.mrf.mxu0 }
 0x213   : > { %875 = vst.msk [vmem:[%s2410_s9 + $0x1a8] sm:$0xff] %vm822_vm7, %v818_v24  ;;  %v819_v31 = vadd.f32 %v2402_v3, %v761_v25  ;;  %v762_v32 = vmul.f32 %v2400_v0, %v702_v28  ;;  %1753 = vst.msk [vmem:[%s2410_s9 + $0x228] sm:$0xff] %vm822_vm7, %v1124_v26  ;;  %v1125_v33 = vadd.f32 %v2546_v61, %v1067_v27 }
 0x214   : > { %v1068_v34 = vmul.f32 %v2535_v54, %v948_v30  ;;  %v1258_v35 = vpop.f32.mrf.mxu1  ;;  %v952_v37 = vpop.f32.mrf.mxu0 }
 0x215   : > { %876 = vst [vmem:[%s2410_s9 + $0x1b0] sm:$0xff] %v819_v31  ;;  %v820_v38 = vadd.f32 %v2402_v3, %v762_v32  ;;  %v1399_v39 = vmul.f32 %v2657_v29, %v1258_v35  ;;  %1754 = vst [vmem:[%s2410_s9 + $0x230] sm:$0xff] %v1125_v33  ;;  %v1069_v40 = vmul.f32 %v2535_v54, %v952_v37 }
 0x216   : > { %v1126_v0 = vadd.f32 %v2546_v61, %v1068_v34  ;;  %v1260_v41 = vpop.f32.mrf.mxu1  ;;  %v954_v42 = vpop.f32.mrf.mxu0 }
 0x217   : > { %877 = vst.msk [vmem:[%s2410_s9 + $0x1b8] sm:$0xff] %vm822_vm7, %v820_v38  ;;  %v1457_v43 = vadd.f32 %v2668_v36, %v1399_v39  ;;  %v1400_v44 = vmul.f32 %v2657_v29, %v1260_v41  ;;  %v1127_v3 = vadd.f32 %v2546_v61, %v1069_v40  ;;  %v1070_v45 = vmul.f32 %v2535_v54, %v954_v42 }
 0x218   : > { %1755 = vst.msk [vmem:[%s2410_s9 + $0x238] sm:$0xff] %vm822_vm7, %v1126_v0  ;;  %v1262_v46 = vpop.f32.mrf.mxu1  ;;  %v956_v47 = vpop.f32.mrf.mxu0 }
 0x219   : > { %1812 = vst [vmem:[%s2410_s9 + $0x380] sm:$0xff] %v1457_v43  ;;  %v1458_v48 = vadd.f32 %v2668_v36, %v1400_v44  ;;  %v1401_v49 = vmul.f32 %v2657_v29, %v1262_v46  ;;  %1756 = vst [vmem:[%s2410_s9 + $0x240] sm:$0xff] %v1127_v3  ;;  %v1128_v50 = vadd.f32 %v2546_v61, %v1070_v45 }
 0x21a   : > { %v1071_v51 = vmul.f32 %v2535_v54, %v956_v47  ;;  %v1264_v52 = vpop.f32.mrf.mxu1  ;;  %v958_v53 = vpop.f32.mrf.mxu0 }
 0x21b   : > { %1813 = vst.msk [vmem:[%s2410_s9 + $0x388] sm:$0xff] %vm822_vm7, %v1458_v48  ;;  %v1459_v55 = vadd.f32 %v2668_v36, %v1401_v49  ;;  %v1402_v56 = vmul.f32 %v2657_v29, %v1264_v52  ;;  %1757 = vst.msk [vmem:[%s2410_s9 + $0x248] sm:$0xff] %vm822_vm7, %v1128_v50  ;;  %v1072_v58 = vmul.f32 %v2535_v54, %v958_v53 }
 0x21c   : > { %v1129_v57 = vadd.f32 %v2546_v61, %v1071_v51  ;;  %v1268_v59 = vpop.f32.mrf.mxu1  ;;  %v962_v60 = vpop.f32.mrf.mxu0 }
 0x21d   : > { %1814 = vst [vmem:[%s2410_s9 + $0x390] sm:$0xff] %v1459_v55  ;;  %v1460_v62 = vadd.f32 %v2668_v36, %v1402_v56  ;;  %v1403_v63 = vmul.f32 %v2657_v29, %v1268_v59  ;;  %v1130_v1 = vadd.f32 %v2546_v61, %v1072_v58  ;;  %v1073_v4 = vmul.f32 %v2535_v54, %v962_v60 }
 0x21e   : > { %1758 = vst [vmem:[%s2410_s9 + $0x250] sm:$0xff] %v1129_v57  ;;  %v1270_v5 = vpop.f32.mrf.mxu1  ;;  %v964_v6 = vpop.f32.mrf.mxu0 }
 0x21f   : > { %1815 = vst.msk [vmem:[%s2410_s9 + $0x398] sm:$0xff] %vm822_vm7, %v1460_v62  ;;  %v1461_v7 = vadd.f32 %v2668_v36, %v1403_v63  ;;  %v1404_v8 = vmul.f32 %v2657_v29, %v1270_v5  ;;  %1759 = vst.msk [vmem:[%s2410_s9 + $0x258] sm:$0xff] %vm822_vm7, %v1130_v1  ;;  %v1131_v2 = vadd.f32 %v2546_v61, %v1073_v4 }
 0x220   : > { %v1074_v9 = vmul.f32 %v2535_v54, %v964_v6  ;;  %v1272_v10 = vpop.f32.mrf.mxu1  ;;  %v966_v11 = vpop.f32.mrf.mxu0 }
 0x221   : > { %1816 = vst [vmem:[%s2410_s9 + $0x3a0] sm:$0xff] %v1461_v7  ;;  %v1462_v12 = vadd.f32 %v2668_v36, %v1404_v8  ;;  %v1405_v13 = vmul.f32 %v2657_v29, %v1272_v10  ;;  %1760 = vst [vmem:[%s2410_s9 + $0x260] sm:$0xff] %v1131_v2  ;;  %v1075_v15 = vmul.f32 %v2535_v54, %v966_v11 }
 0x222   : > { %v1132_v14 = vadd.f32 %v2546_v61, %v1074_v9  ;;  %v1274_v16 = vpop.f32.mrf.mxu1  ;;  %v968_v17 = vpop.f32.mrf.mxu0 }
 0x223   : > { %1817 = vst.msk [vmem:[%s2410_s9 + $0x3a8] sm:$0xff] %vm822_vm7, %v1462_v12  ;;  %v1463_v18 = vadd.f32 %v2668_v36, %v1405_v13  ;;  %v1406_v19 = vmul.f32 %v2657_v29, %v1274_v16  ;;  %v1133_v20 = vadd.f32 %v2546_v61, %v1075_v15  ;;  %v1076_v21 = vmul.f32 %v2535_v54, %v968_v17 }
 0x224   : > { %1761 = vst.msk [vmem:[%s2410_s9 + $0x268] sm:$0xff] %vm822_vm7, %v1132_v14  ;;  %v1278_v22 = vpop.f32.mrf.mxu1  ;;  %v972_v23 = vpop.f32.mrf.mxu0 }
 0x225   : > { %1818 = vst [vmem:[%s2410_s9 + $0x3b0] sm:$0xff] %v1463_v18  ;;  %v1464_v24 = vadd.f32 %v2668_v36, %v1406_v19  ;;  %v1407_v25 = vmul.f32 %v2657_v29, %v1278_v22  ;;  %1762 = vst [vmem:[%s2410_s9 + $0x270] sm:$0xff] %v1133_v20  ;;  %v1134_v26 = vadd.f32 %v2546_v61, %v1076_v21 }
 0x226   : > { %v1077_v27 = vmul.f32 %v2535_v54, %v972_v23  ;;  %v1280_v28 = vpop.f32.mrf.mxu1  ;;  %v974_v30 = vpop.f32.mrf.mxu0 }
 0x227   : > { %1819 = vst.msk [vmem:[%s2410_s9 + $0x3b8] sm:$0xff] %vm822_vm7, %v1464_v24  ;;  %v1465_v31 = vadd.f32 %v2668_v36, %v1407_v25  ;;  %v1408_v32 = vmul.f32 %v2657_v29, %v1280_v28  ;;  %1763 = vst.msk [vmem:[%s2410_s9 + $0x278] sm:$0xff] %vm822_vm7, %v1134_v26  ;;  %v1078_v34 = vmul.f32 %v2535_v54, %v974_v30 }
 0x228   : > { %v1135_v33 = vadd.f32 %v2546_v61, %v1077_v27  ;;  %v1282_v35 = vpop.f32.mrf.mxu1  ;;  %v976_v37 = vpop.f32.mrf.mxu0 }
 0x229   : > { %1820 = vst [vmem:[%s2410_s9 + $0x3c0] sm:$0xff] %v1465_v31  ;;  %v1466_v38 = vadd.f32 %v2668_v36, %v1408_v32  ;;  %v1409_v39 = vmul.f32 %v2657_v29, %v1282_v35  ;;  %v1136_v0 = vadd.f32 %v2546_v61, %v1078_v34  ;;  %v1079_v40 = vmul.f32 %v2535_v54, %v976_v37 }
 0x22a   : > { %1764 = vst [vmem:[%s2410_s9 + $0x280] sm:$0xff] %v1135_v33  ;;  %v1284_v41 = vpop.f32.mrf.mxu1  ;;  %v978_v42 = vpop.f32.mrf.mxu0 }
 0x22b   : > { %1821 = vst.msk [vmem:[%s2410_s9 + $0x3c8] sm:$0xff] %vm822_vm7, %v1466_v38  ;;  %v1467_v43 = vadd.f32 %v2668_v36, %v1409_v39  ;;  %v1410_v44 = vmul.f32 %v2657_v29, %v1284_v41  ;;  %1765 = vst.msk [vmem:[%s2410_s9 + $0x288] sm:$0xff] %vm822_vm7, %v1136_v0  ;;  %v1137_v3 = vadd.f32 %v2546_v61, %v1079_v40 }
 0x22c   : > { %v1080_v45 = vmul.f32 %v2535_v54, %v978_v42  ;;  %v1288_v46 = vpop.f32.mrf.mxu1  ;;  %v982_v47 = vpop.f32.mrf.mxu0 }
 0x22d   : > { %1822 = vst [vmem:[%s2410_s9 + $0x3d0] sm:$0xff] %v1467_v43  ;;  %v1468_v48 = vadd.f32 %v2668_v36, %v1410_v44  ;;  %v1411_v49 = vmul.f32 %v2657_v29, %v1288_v46  ;;  %1766 = vst [vmem:[%s2410_s9 + $0x290] sm:$0xff] %v1137_v3  ;;  %v1081_v51 = vmul.f32 %v2535_v54, %v982_v47 }
 0x22e   : > { %v1138_v50 = vadd.f32 %v2546_v61, %v1080_v45  ;;  %v1290_v52 = vpop.f32.mrf.mxu1  ;;  %v984_v53 = vpop.f32.mrf.mxu0 }
 0x22f   : > { %1823 = vst.msk [vmem:[%s2410_s9 + $0x3d8] sm:$0xff] %vm822_vm7, %v1468_v48  ;;  %v1469_v55 = vadd.f32 %v2668_v36, %v1411_v49  ;;  %v1412_v56 = vmul.f32 %v2657_v29, %v1290_v52  ;;  %v1139_v57 = vadd.f32 %v2546_v61, %v1081_v51  ;;  %v1082_v58 = vmul.f32 %v2535_v54, %v984_v53 }
 0x230   : > { %1767 = vst.msk [vmem:[%s2410_s9 + $0x298] sm:$0xff] %vm822_vm7, %v1138_v50  ;;  %v1292_v59 = vpop.f32.mrf.mxu1  ;;  %v986_v60 = vpop.f32.mrf.mxu0 }
 0x231   : > { %1824 = vst [vmem:[%s2410_s9 + $0x3e0] sm:$0xff] %v1469_v55  ;;  %v1470_v62 = vadd.f32 %v2668_v36, %v1412_v56  ;;  %v1413_v63 = vmul.f32 %v2657_v29, %v1292_v59  ;;  %1768 = vst [vmem:[%s2410_s9 + $0x2a0] sm:$0xff] %v1139_v57  ;;  %v1140_v1 = vadd.f32 %v2546_v61, %v1082_v58 }
 0x232   : > { %v1083_v4 = vmul.f32 %v2535_v54, %v986_v60  ;;  %v1294_v5 = vpop.f32.mrf.mxu1  ;;  %v988_v6 = vpop.f32.mrf.mxu0 }
 0x233   : > { %1825 = vst.msk [vmem:[%s2410_s9 + $0x3e8] sm:$0xff] %vm822_vm7, %v1470_v62  ;;  %v1471_v7 = vadd.f32 %v2668_v36, %v1413_v63  ;;  %v1414_v8 = vmul.f32 %v2657_v29, %v1294_v5  ;;  %1769 = vst.msk [vmem:[%s2410_s9 + $0x2a8] sm:$0xff] %vm822_vm7, %v1140_v1  ;;  %v1084_v9 = vmul.f32 %v2535_v54, %v988_v6 }
 0x234   : > { %v1141_v2 = vadd.f32 %v2546_v61, %v1083_v4  ;;  %v1298_v10 = vpop.f32.mrf.mxu1  ;;  %v992_v11 = vpop.f32.mrf.mxu0 }
 0x235   : > { %1826 = vst [vmem:[%s2410_s9 + $0x3f0] sm:$0xff] %v1471_v7  ;;  %v1472_v12 = vadd.f32 %v2668_v36, %v1414_v8  ;;  %v1415_v13 = vmul.f32 %v2657_v29, %v1298_v10  ;;  %v1142_v14 = vadd.f32 %v2546_v61, %v1084_v9  ;;  %v1085_v15 = vmul.f32 %v2535_v54, %v992_v11 }
 0x236   : > { %1770 = vst [vmem:[%s2410_s9 + $0x2b0] sm:$0xff] %v1141_v2  ;;  %v1300_v16 = vpop.f32.mrf.mxu1  ;;  %v994_v17 = vpop.f32.mrf.mxu0 }
 0x237   : > { %1827 = vst.msk [vmem:[%s2410_s9 + $0x3f8] sm:$0xff] %vm822_vm7, %v1472_v12  ;;  %v1473_v18 = vadd.f32 %v2668_v36, %v1415_v13  ;;  %v1416_v19 = vmul.f32 %v2657_v29, %v1300_v16  ;;  %1771 = vst.msk [vmem:[%s2410_s9 + $0x2b8] sm:$0xff] %vm822_vm7, %v1142_v14  ;;  %v1143_v20 = vadd.f32 %v2546_v61, %v1085_v15 }
 0x238   : > { %v1086_v21 = vmul.f32 %v2535_v54, %v994_v17  ;;  %v1302_v22 = vpop.f32.mrf.mxu1  ;;  %v996_v23 = vpop.f32.mrf.mxu0 }
 0x239   : > { %1828 = vst [vmem:[%s2410_s9 + $0x400] sm:$0xff] %v1473_v18  ;;  %v1474_v24 = vadd.f32 %v2668_v36, %v1416_v19  ;;  %v1417_v25 = vmul.f32 %v2657_v29, %v1302_v22  ;;  %1772 = vst [vmem:[%s2410_s9 + $0x2c0] sm:$0xff] %v1143_v20  ;;  %v1087_v27 = vmul.f32 %v2535_v54, %v996_v23 }
 0x23a   : > { %v1144_v26 = vadd.f32 %v2546_v61, %v1086_v21  ;;  %v1304_v28 = vpop.f32.mrf.mxu1  ;;  %v998_v30 = vpop.f32.mrf.mxu0 }
 0x23b   : > { %1829 = vst.msk [vmem:[%s2410_s9 + $0x408] sm:$0xff] %vm822_vm7, %v1474_v24  ;;  %v1475_v31 = vadd.f32 %v2668_v36, %v1417_v25  ;;  %v1418_v32 = vmul.f32 %v2657_v29, %v1304_v28  ;;  %v1145_v33 = vadd.f32 %v2546_v61, %v1087_v27  ;;  %v1088_v34 = vmul.f32 %v2535_v54, %v998_v30 }
 0x23c   : > { %1773 = vst.msk [vmem:[%s2410_s9 + $0x2c8] sm:$0xff] %vm822_vm7, %v1144_v26  ;;  %v1308_v35 = vpop.f32.mrf.mxu1  ;;  %v1002_v37 = vpop.f32.mrf.mxu0 }
 0x23d   : > { %1830 = vst [vmem:[%s2410_s9 + $0x410] sm:$0xff] %v1475_v31  ;;  %v1476_v38 = vadd.f32 %v2668_v36, %v1418_v32  ;;  %v1419_v39 = vmul.f32 %v2657_v29, %v1308_v35  ;;  %1774 = vst [vmem:[%s2410_s9 + $0x2d0] sm:$0xff] %v1145_v33  ;;  %v1146_v0 = vadd.f32 %v2546_v61, %v1088_v34 }
 0x23e   : > { %v1089_v40 = vmul.f32 %v2535_v54, %v1002_v37  ;;  %v1310_v41 = vpop.f32.mrf.mxu1  ;;  %v1004_v42 = vpop.f32.mrf.mxu0 }
 0x23f   : > { %1831 = vst.msk [vmem:[%s2410_s9 + $0x418] sm:$0xff] %vm822_vm7, %v1476_v38  ;;  %v1477_v43 = vadd.f32 %v2668_v36, %v1419_v39  ;;  %v1420_v44 = vmul.f32 %v2657_v29, %v1310_v41  ;;  %1775 = vst.msk [vmem:[%s2410_s9 + $0x2d8] sm:$0xff] %vm822_vm7, %v1146_v0  ;;  %v1090_v45 = vmul.f32 %v2535_v54, %v1004_v42 }
 0x240   : > { %v1147_v3 = vadd.f32 %v2546_v61, %v1089_v40  ;;  %v1312_v46 = vpop.f32.mrf.mxu1  ;;  %v1006_v47 = vpop.f32.mrf.mxu0 }
 0x241   : > { %1832 = vst [vmem:[%s2410_s9 + $0x420] sm:$0xff] %v1477_v43  ;;  %v1478_v48 = vadd.f32 %v2668_v36, %v1420_v44  ;;  %v1421_v49 = vmul.f32 %v2657_v29, %v1312_v46  ;;  %v1148_v50 = vadd.f32 %v2546_v61, %v1090_v45  ;;  %v1091_v51 = vmul.f32 %v2535_v54, %v1006_v47 }
 0x242   : > { %1776 = vst [vmem:[%s2410_s9 + $0x2e0] sm:$0xff] %v1147_v3  ;;  %v1314_v52 = vpop.f32.mrf.mxu1  ;;  %v1008_v53 = vpop.f32.mrf.mxu0 }
 0x243   : > { %1833 = vst.msk [vmem:[%s2410_s9 + $0x428] sm:$0xff] %vm822_vm7, %v1478_v48  ;;  %v1479_v55 = vadd.f32 %v2668_v36, %v1421_v49  ;;  %v1422_v56 = vmul.f32 %v2657_v29, %v1314_v52  ;;  %1777 = vst.msk [vmem:[%s2410_s9 + $0x2e8] sm:$0xff] %vm822_vm7, %v1148_v50  ;;  %v1149_v57 = vadd.f32 %v2546_v61, %v1091_v51 }
 0x244   : > { %v1092_v58 = vmul.f32 %v2535_v54, %v1008_v53  ;;  %v1318_v59 = vpop.f32.mrf.mxu1  ;;  %v1012_v60 = vpop.f32.mrf.mxu0 }
 0x245   : > { %1834 = vst [vmem:[%s2410_s9 + $0x430] sm:$0xff] %v1479_v55  ;;  %v1480_v62 = vadd.f32 %v2668_v36, %v1422_v56  ;;  %v1423_v63 = vmul.f32 %v2657_v29, %v1318_v59  ;;  %1778 = vst [vmem:[%s2410_s9 + $0x2f0] sm:$0xff] %v1149_v57  ;;  %v1093_v4 = vmul.f32 %v2535_v54, %v1012_v60 }
 0x246   : > { %v1150_v1 = vadd.f32 %v2546_v61, %v1092_v58  ;;  %v1320_v5 = vpop.f32.mrf.mxu1  ;;  %v1014_v6 = vpop.f32.mrf.mxu0 }
 0x247   : > { %1835 = vst.msk [vmem:[%s2410_s9 + $0x438] sm:$0xff] %vm822_vm7, %v1480_v62  ;;  %v1481_v7 = vadd.f32 %v2668_v36, %v1423_v63  ;;  %v1424_v8 = vmul.f32 %v2657_v29, %v1320_v5  ;;  %v1151_v2 = vadd.f32 %v2546_v61, %v1093_v4  ;;  %v1094_v9 = vmul.f32 %v2535_v54, %v1014_v6 }
 0x248   : > { %1779 = vst.msk [vmem:[%s2410_s9 + $0x2f8] sm:$0xff] %vm822_vm7, %v1150_v1  ;;  %v1322_v10 = vpop.f32.mrf.mxu1  ;;  %v1016_v11 = vpop.f32.mrf.mxu0 }
 0x249   : > { %1836 = vst [vmem:[%s2410_s9 + $0x440] sm:$0xff] %v1481_v7  ;;  %v1482_v12 = vadd.f32 %v2668_v36, %v1424_v8  ;;  %v1425_v13 = vmul.f32 %v2657_v29, %v1322_v10  ;;  %1780 = vst [vmem:[%s2410_s9 + $0x300] sm:$0xff] %v1151_v2  ;;  %v1152_v14 = vadd.f32 %v2546_v61, %v1094_v9 }
 0x24a   : > { %v1095_v15 = vmul.f32 %v2535_v54, %v1016_v11  ;;  %v1324_v16 = vpop.f32.mrf.mxu1  ;;  %v1018_v17 = vpop.f32.mrf.mxu0 }
 0x24b   : > { %1837 = vst.msk [vmem:[%s2410_s9 + $0x448] sm:$0xff] %vm822_vm7, %v1482_v12  ;;  %v1483_v18 = vadd.f32 %v2668_v36, %v1425_v13  ;;  %v1426_v19 = vmul.f32 %v2657_v29, %v1324_v16  ;;  %1781 = vst.msk [vmem:[%s2410_s9 + $0x308] sm:$0xff] %vm822_vm7, %v1152_v14  ;;  %v1096_v21 = vmul.f32 %v2535_v54, %v1018_v17 }
 0x24c   : > { %v1153_v20 = vadd.f32 %v2546_v61, %v1095_v15  ;;  %v1328_v22 = vpop.f32.mrf.mxu1  ;;  %v1022_v23 = vpop.f32.mrf.mxu0 }
 0x24d   : > { %1838 = vst [vmem:[%s2410_s9 + $0x450] sm:$0xff] %v1483_v18  ;;  %v1484_v24 = vadd.f32 %v2668_v36, %v1426_v19  ;;  %v1427_v25 = vmul.f32 %v2657_v29, %v1328_v22  ;;  %v1154_v26 = vadd.f32 %v2546_v61, %v1096_v21  ;;  %v1097_v27 = vmul.f32 %v2535_v54, %v1022_v23 }
 0x24e   : > { %1782 = vst [vmem:[%s2410_s9 + $0x310] sm:$0xff] %v1153_v20  ;;  %v1330_v28 = vpop.f32.mrf.mxu1  ;;  %v1024_v30 = vpop.f32.mrf.mxu0 }
 0x24f   : > { %1839 = vst.msk [vmem:[%s2410_s9 + $0x458] sm:$0xff] %vm822_vm7, %v1484_v24  ;;  %v1485_v31 = vadd.f32 %v2668_v36, %v1427_v25  ;;  %v1428_v32 = vmul.f32 %v2657_v29, %v1330_v28  ;;  %1783 = vst.msk [vmem:[%s2410_s9 + $0x318] sm:$0xff] %vm822_vm7, %v1154_v26  ;;  %v1155_v33 = vadd.f32 %v2546_v61, %v1097_v27 }
 0x250   : > { %v1098_v34 = vmul.f32 %v2535_v54, %v1024_v30  ;;  %v1332_v35 = vpop.f32.mrf.mxu1  ;;  %v1026_v37 = vpop.f32.mrf.mxu0 }
 0x251   : > { %1840 = vst [vmem:[%s2410_s9 + $0x460] sm:$0xff] %v1485_v31  ;;  %v1486_v38 = vadd.f32 %v2668_v36, %v1428_v32  ;;  %v1429_v39 = vmul.f32 %v2657_v29, %v1332_v35  ;;  %1784 = vst [vmem:[%s2410_s9 + $0x320] sm:$0xff] %v1155_v33  ;;  %v1099_v40 = vmul.f32 %v2535_v54, %v1026_v37 }
 0x252   : > { %v1156_v0 = vadd.f32 %v2546_v61, %v1098_v34  ;;  %v1334_v41 = vpop.f32.mrf.mxu1  ;;  %v1028_v42 = vpop.f32.mrf.mxu0 }
 0x253   : > { %1841 = vst.msk [vmem:[%s2410_s9 + $0x468] sm:$0xff] %vm822_vm7, %v1486_v38  ;;  %v1487_v43 = vadd.f32 %v2668_v36, %v1429_v39  ;;  %v1430_v44 = vmul.f32 %v2657_v29, %v1334_v41  ;;  %v1157_v3 = vadd.f32 %v2546_v61, %v1099_v40  ;;  %v1100_v45 = vmul.f32 %v2535_v54, %v1028_v42 }
 0x254   : > { %1785 = vst.msk [vmem:[%s2410_s9 + $0x328] sm:$0xff] %vm822_vm7, %v1156_v0  ;;  %v1338_v46 = vpop.f32.mrf.mxu1  ;;  %v1032_v47 = vpop.f32.mrf.mxu0 }
 0x255   : > { %1842 = vst [vmem:[%s2410_s9 + $0x470] sm:$0xff] %v1487_v43  ;;  %v1488_v48 = vadd.f32 %v2668_v36, %v1430_v44  ;;  %v1431_v49 = vmul.f32 %v2657_v29, %v1338_v46  ;;  %1786 = vst [vmem:[%s2410_s9 + $0x330] sm:$0xff] %v1157_v3  ;;  %v1158_v50 = vadd.f32 %v2546_v61, %v1100_v45 }
 0x256   : > { %v1101_v51 = vmul.f32 %v2535_v54, %v1032_v47  ;;  %v1340_v52 = vpop.f32.mrf.mxu1  ;;  %v1034_v53 = vpop.f32.mrf.mxu0 }
 0x257   : > { %1843 = vst.msk [vmem:[%s2410_s9 + $0x478] sm:$0xff] %vm822_vm7, %v1488_v48  ;;  %v1489_v55 = vadd.f32 %v2668_v36, %v1431_v49  ;;  %v1432_v56 = vmul.f32 %v2657_v29, %v1340_v52  ;;  %1787 = vst.msk [vmem:[%s2410_s9 + $0x338] sm:$0xff] %vm822_vm7, %v1158_v50  ;;  %v1102_v58 = vmul.f32 %v2535_v54, %v1034_v53 }
 0x258   : > { %v1159_v57 = vadd.f32 %v2546_v61, %v1101_v51  ;;  %v1342_v59 = vpop.f32.mrf.mxu1  ;;  %v1036_v60 = vpop.f32.mrf.mxu0 }
 0x259   : > { %1844 = vst [vmem:[%s2410_s9 + $0x480] sm:$0xff] %v1489_v55  ;;  %v1490_v62 = vadd.f32 %v2668_v36, %v1432_v56  ;;  %v1433_v63 = vmul.f32 %v2657_v29, %v1342_v59  ;;  %v1160_v1 = vadd.f32 %v2546_v61, %v1102_v58  ;;  %v1103_v4 = vmul.f32 %v2535_v54, %v1036_v60 }
 0x25a   : > { %1788 = vst [vmem:[%s2410_s9 + $0x340] sm:$0xff] %v1159_v57  ;;  %v1344_v5 = vpop.f32.mrf.mxu1  ;;  %v1038_v6 = vpop.f32.mrf.mxu0 }
 0x25b   : > { %1845 = vst.msk [vmem:[%s2410_s9 + $0x488] sm:$0xff] %vm822_vm7, %v1490_v62  ;;  %v1491_v7 = vadd.f32 %v2668_v36, %v1433_v63  ;;  %v1434_v8 = vmul.f32 %v2657_v29, %v1344_v5  ;;  %1789 = vst.msk [vmem:[%s2410_s9 + $0x348] sm:$0xff] %vm822_vm7, %v1160_v1  ;;  %v1161_v2 = vadd.f32 %v2546_v61, %v1103_v4 }
 0x25c   : > { %v1104_v9 = vmul.f32 %v2535_v54, %v1038_v6  ;;  %v1348_v10 = vpop.f32.mrf.mxu1  ;;  %v1042_v11 = vpop.f32.mrf.mxu0 }
 0x25d   : > { %1846 = vst [vmem:[%s2410_s9 + $0x490] sm:$0xff] %v1491_v7  ;;  %v1492_v12 = vadd.f32 %v2668_v36, %v1434_v8  ;;  %v1435_v13 = vmul.f32 %v2657_v29, %v1348_v10  ;;  %1790 = vst [vmem:[%s2410_s9 + $0x350] sm:$0xff] %v1161_v2  ;;  %v1105_v15 = vmul.f32 %v2535_v54, %v1042_v11 }
 0x25e   : > { %v1162_v14 = vadd.f32 %v2546_v61, %v1104_v9  ;;  %v1350_v16 = vpop.f32.mrf.mxu1  ;;  %v1044_v17 = vpop.f32.mrf.mxu0 }
 0x25f   : > { %1847 = vst.msk [vmem:[%s2410_s9 + $0x498] sm:$0xff] %vm822_vm7, %v1492_v12  ;;  %v1493_v18 = vadd.f32 %v2668_v36, %v1435_v13  ;;  %v1436_v19 = vmul.f32 %v2657_v29, %v1350_v16  ;;  %v1163_v20 = vadd.f32 %v2546_v61, %v1105_v15  ;;  %v1106_v21 = vmul.f32 %v2535_v54, %v1044_v17 }
 0x260   : > { %1791 = vst.msk [vmem:[%s2410_s9 + $0x358] sm:$0xff] %vm822_vm7, %v1162_v14  ;;  %v1352_v22 = vpop.f32.mrf.mxu1  ;;  %v1046_v23 = vpop.f32.mrf.mxu0 }
 0x261   : > { %1848 = vst [vmem:[%s2410_s9 + $0x4a0] sm:$0xff] %v1493_v18  ;;  %v1494_v24 = vadd.f32 %v2668_v36, %v1436_v19  ;;  %v1437_v25 = vmul.f32 %v2657_v29, %v1352_v22  ;;  %1792 = vst [vmem:[%s2410_s9 + $0x360] sm:$0xff] %v1163_v20  ;;  %v1164_v26 = vadd.f32 %v2546_v61, %v1106_v21 }
 0x262   : > { %v1107_v27 = vmul.f32 %v2535_v54, %v1046_v23  ;;  %v1354_v28 = vpop.f32.mrf.mxu1  ;;  %v1048_v30 = vpop.f32.mrf.mxu0 }
 0x263   : > { %1849 = vst.msk [vmem:[%s2410_s9 + $0x4a8] sm:$0xff] %vm822_vm7, %v1494_v24  ;;  %v1495_v31 = vadd.f32 %v2668_v36, %v1437_v25  ;;  %v1438_v32 = vmul.f32 %v2657_v29, %v1354_v28  ;;  %1793 = vst.msk [vmem:[%s2410_s9 + $0x368] sm:$0xff] %vm822_vm7, %v1164_v26  ;;  %v1108_v34 = vmul.f32 %v2535_v54, %v1048_v30 }
 0x264   : > { %v1165_v33 = vadd.f32 %v2546_v61, %v1107_v27  ;;  %v1358_v35 = vpop.f32.mrf.mxu1 }
 0x265   : > { %1850 = vst [vmem:[%s2410_s9 + $0x4b0] sm:$0xff] %v1495_v31  ;;  %v1496_v37 = vadd.f32 %v2668_v36, %v1438_v32  ;;  %v1439_v38 = vmul.f32 %v2657_v29, %v1358_v35  ;;  %v1166_v39 = vadd.f32 %v2546_v61, %v1108_v34 }
 0x266   : > { %1794 = vst [vmem:[%s2410_s9 + $0x370] sm:$0xff] %v1165_v33  ;;  %v1360_v0 = vpop.f32.mrf.mxu1 }
 0x267   : > { %1851 = vst.msk [vmem:[%s2410_s9 + $0x4b8] sm:$0xff] %vm822_vm7, %v1496_v37  ;;  %v1497_v40 = vadd.f32 %v2668_v36, %v1439_v38  ;;  %v1440_v41 = vmul.f32 %v2657_v29, %v1360_v0  ;;  %1795 = vst.msk [vmem:[%s2410_s9 + $0x378] sm:$0xff] %vm822_vm7, %v1166_v39 }
 0x268   : > { %v1362_v54 = vpop.f32.mrf.mxu1 }
 0x269   : > { %1852 = vst [vmem:[%s2410_s9 + $0x4c0] sm:$0xff] %v1497_v40  ;;  %v1498_v42 = vadd.f32 %v2668_v36, %v1440_v41  ;;  %v1441_v43 = vmul.f32 %v2657_v29, %v1362_v54 }
 0x26a   : > { %v1364_v44 = vpop.f32.mrf.mxu1 }
 0x26b   : > { %1853 = vst.msk [vmem:[%s2410_s9 + $0x4c8] sm:$0xff] %vm822_vm7, %v1498_v42  ;;  %v1499_v61 = vadd.f32 %v2668_v36, %v1441_v43  ;;  %v1442_v3 = vmul.f32 %v2657_v29, %v1364_v44 }
 0x26c   : > { %v1368_v45 = vpop.f32.mrf.mxu1 }
 0x26d   : > { %1854 = vst [vmem:[%s2410_s9 + $0x4d0] sm:$0xff] %v1499_v61  ;;  %v1500_v46 = vadd.f32 %v2668_v36, %v1442_v3  ;;  %v1443_v47 = vmul.f32 %v2657_v29, %v1368_v45 }
 0x26e   : > { %v1370_v48 = vpop.f32.mrf.mxu1 }
 0x26f   : > { %1855 = vst.msk [vmem:[%s2410_s9 + $0x4d8] sm:$0xff] %vm822_vm7, %v1500_v46  ;;  %v1501_v49 = vadd.f32 %v2668_v36, %v1443_v47  ;;  %v1444_v50 = vmul.f32 %v2657_v29, %v1370_v48 }
 0x270   : > { %v1372_v51 = vpop.f32.mrf.mxu1 }
 0x271   : > { %1856 = vst [vmem:[%s2410_s9 + $0x4e0] sm:$0xff] %v1501_v49  ;;  %v1502_v52 = vadd.f32 %v2668_v36, %v1444_v50  ;;  %v1445_v53 = vmul.f32 %v2657_v29, %v1372_v51 }
 0x272   : > { %v1374_v55 = vpop.f32.mrf.mxu1 }
 0x273   : > { %1857 = vst.msk [vmem:[%s2410_s9 + $0x4e8] sm:$0xff] %vm822_vm7, %v1502_v52  ;;  %v1503_v56 = vadd.f32 %v2668_v36, %v1445_v53  ;;  %v1446_v57 = vmul.f32 %v2657_v29, %v1374_v55 }
 0x274   : > { %v1378_v58 = vpop.f32.mrf.mxu1 }
 0x275   : > { %1858 = vst [vmem:[%s2410_s9 + $0x4f0] sm:$0xff] %v1503_v56  ;;  %v1504_v59 = vadd.f32 %v2668_v36, %v1446_v57  ;;  %v1447_v60 = vmul.f32 %v2657_v29, %v1378_v58 }
 0x276   : > { %v1380_v62 = vpop.f32.mrf.mxu1 }
 0x277   : > { %1859 = vst.msk [vmem:[%s2410_s9 + $0x4f8] sm:$0xff] %vm822_vm7, %v1504_v59  ;;  %v1505_v63 = vadd.f32 %v2668_v36, %v1447_v60  ;;  %v1448_v1 = vmul.f32 %v2657_v29, %v1380_v62 }
 0x278   : > { %v1382_v4 = vpop.f32.mrf.mxu1 }
 0x279   : > { %1860 = vst [vmem:[%s2410_s9 + $0x500] sm:$0xff] %v1505_v63  ;;  %v1506_v5 = vadd.f32 %v2668_v36, %v1448_v1  ;;  %v1449_v6 = vmul.f32 %v2657_v29, %v1382_v4 }
 0x27a   : > { %v1384_v7 = vpop.f32.mrf.mxu1 }
 0x27b   : > { %1861 = vst.msk [vmem:[%s2410_s9 + $0x508] sm:$0xff] %vm822_vm7, %v1506_v5  ;;  %v1507_v8 = vadd.f32 %v2668_v36, %v1449_v6  ;;  %v1450_v2 = vmul.f32 %v2657_v29, %v1384_v7 }
 0x27c   : > { %v1388_v9 = vpop.f32.mrf.mxu1 }
 0x27d   : > { %1862 = vst [vmem:[%s2410_s9 + $0x510] sm:$0xff] %v1507_v8  ;;  %v1508_v10 = vadd.f32 %v2668_v36, %v1450_v2  ;;  %v1451_v11 = vmul.f32 %v2657_v29, %v1388_v9 }
 0x27e   : > { %v1390_v12 = vpop.f32.mrf.mxu1 }
 0x27f   : > { %1863 = vst.msk [vmem:[%s2410_s9 + $0x518] sm:$0xff] %vm822_vm7, %v1508_v10  ;;  %v1509_v13 = vadd.f32 %v2668_v36, %v1451_v11  ;;  %v1452_v14 = vmul.f32 %v2657_v29, %v1390_v12 }
 0x280   : > { %v1392_v15 = vpop.f32.mrf.mxu1 }
 0x281   : > { %1864 = vst [vmem:[%s2410_s9 + $0x520] sm:$0xff] %v1509_v13  ;;  %v1510_v16 = vadd.f32 %v2668_v36, %v1452_v14  ;;  %v1453_v17 = vmul.f32 %v2657_v29, %v1392_v15 }
 0x282   : > { %v1394_v18 = vpop.f32.mrf.mxu1 }
 0x283   : > { %1865 = vst.msk [vmem:[%s2410_s9 + $0x528] sm:$0xff] %vm822_vm7, %v1510_v16  ;;  %v1511_v19 = vadd.f32 %v2668_v36, %v1453_v17  ;;  %v1454_v20 = vmul.f32 %v2657_v29, %v1394_v18 }
 0x285   : > { %1866 = vst [vmem:[%s2410_s9 + $0x530] sm:$0xff] %v1511_v19  ;;  %v1512_v21 = vadd.f32 %v2668_v36, %v1454_v20 }
 0x287   : > { %1867 = vst.msk [vmem:[%s2410_s9 + $0x538] sm:$0xff] %vm822_vm7, %v1512_v21 }
 0x288   : > { %2043 = shalt.err (!%p2040_p2)
}
 0x289   : > { %s2044_s7 = scalar_lea.hbm %s3015_s23, 21504  ;;  %s2048_s10 = scalar_lea.hbm %s3070_s5, 43008 }
 0x28a   : > { %p2045_p3 = scmp.ne.s32.totalorder %s3015_s23, %s2044_s7  ;;  %p2049_p8 = scmp.lt.s32.totalorder %s3015_s23, %s3070_s5 }
 0x28b   : > { %p2050_p9 = scmp.lt.s32.totalorder %s2048_s10, %s2044_s7 }
 0x28c   : > { %p2046_p4 = pnand %p2045_p3, %p2181_p5 }
 0x28d   : > { %p2051_p10 = por %p2050_p9, %p2049_p8 }
 0x28e   : > { %p2047_p7 = pneg %p2046_p4 }
 0x290   : > { %p2052_p11 = pnand %p2051_p10, %p2047_p7 }
 0x292   : > { %2055 = shalt.err (!%p2052_p11)
}
 0x293   : > { %s2111_s13 = smov 256   ;;  %s2112_s14 = smov 16  }
 0x294   : > { %1902 = dma.vmem_to_hbm [thread:$0]  (%p2181_p5), %s3017_s15, 21504, %s3015_s23, %s3025_s22, %s2111_s13, %s2111_s13, %s2112_s14  }
 0x295 PF: > { %p1924_p12 = scmp.ge.s32.totalorder %s2102_s21, 2  ;;  %s1599_s16 = sand.u32 1, %s2090_s18  }
 0x296   : > { %s1600_s17 = scalar_lea.sflag [#allocation4], %s1599_s16 }
 0x297   : > { %p1915_p13 = pnand %p1924_p12, %p2185_p6 }
 0x299   : > { %p1916_p0 = pneg %p1915_p13 }
 0x29b   : > { %2085 = dma.done.wait (%p1916_p0), %s1600_s17, 21504  }
 0x29c   : > { %2087 = vsyncadd (%p1916_p0), %s1600_s17, 4294945792  ;;  %p18_p1 = scmp.ge.s32.totalorder %s2168_s24, 4   ;;  %s3075_s18 = smov %s2094_s19 }
 0x29d   : > { %s3076_s19 = smov %s2098_s20  ;;  %s3077_s20 = smov %s2179_s27 }
 0x29e   : > { %s3078_s21 = smov %s2168_s24  ;;  %20 = sbr.rel (!%p18_p1) target bundleno = 6 (0x6), region = 91 }
 0x2a3   :  { %1605 = vsyncpa [#allocation3], 1 }
 0x2a4   :  { %1607 = vsyncpa [#allocation3 + $0x1], 1 }
 0x2a5   :  { %1608 = vsyncpa [#allocation4], 1 }
 0x2a6   :  { %1610 = vsyncpa [#allocation4 + $0x1], 1 }
 0x2a7   :  { %1611 = vsyncpa [#allocation5], 1 }
 0x2a8   :  { %1613 = vsyncpa [#allocation5 + $0x1], 1 }
 0x2a9   :  { %1614 = vsyncpa [#allocation7], 1 }

</bundles_post_ra>
